<compile_context>
chip_gen: v5e
topology: v5e:2x2
jax: 0.10.0
libtpu: 0.0.40
codegen_flags: <defaults>
</compile_context>

<pallas_src>
import jax
import jax.numpy as jnp
from jax.experimental import pallas as pl
from jax.experimental.pallas import tpu as pltpu

EPS = 1e-5  # PyTorch BatchNorm2d default eps


# --------------------------------------------------------------------------
# In-kernel helpers
# --------------------------------------------------------------------------
def _depthwise3x3(x_ref, dww_ref):
    """3x3 depthwise conv (stride 1, pad 1) of one (Bt, H, W, C) tile, f32 accumulation.

    kh shifts: static slices along H (outer dim, tile-aligned, cheap).
    kw shifts: pltpu.roll along the W sublane axis (XLU) + boundary mask, so no
    sublane-misaligned slices and no (H+2, W+2, C) padded copy is materialized.
    """
    x = x_ref[...].astype(jnp.float32)               # (Bt, H, W, C)
    dww = dww_ref[...].astype(jnp.float32)           # (9, C), tap order k = 3*kh + kw
    Bt, H, W, C = x.shape

    # Zero-pad along H only (outer dim -> aligned copy).
    zh = jnp.zeros((Bt, 1, W, C), jnp.float32)
    xp = jnp.concatenate([zh, x, zh], axis=1)        # (Bt, H+2, W, C)

    # Column-validity masks for the wrapped positions of the W rolls.
    w_idx = jax.lax.broadcasted_iota(jnp.int32, (1, 1, W, 1), 2)
    mask_left = (w_idx >= 1).astype(jnp.float32)      # kw = 0 needs x[w-1]
    mask_right = (w_idx <= W - 2).astype(jnp.float32)  # kw = 2 needs x[w+1]

    acc = jnp.zeros((Bt, H, W, C), jnp.float32)
    for kw in range(3):
        if kw == 0:
            shifted = pltpu.roll(xp, 1, axis=2) * mask_left
        elif kw == 1:
            shifted = xp
        else:
            shifted = pltpu.roll(xp, W - 1, axis=2) * mask_right
        for kh in range(3):
            w_k = dww[3 * kh + kw:3 * kh + kw + 1, :].reshape(1, 1, 1, C)
            acc = acc + shifted[:, kh:kh + H] * w_k
    return acc


def _partial_stats(v2):
    """v2: (M, C) -> (1, 2, C) with [sum, sum of squares] per channel."""
    s = jnp.sum(v2, axis=0, keepdims=True)            # (1, C)
    q = jnp.sum(v2 * v2, axis=0, keepdims=True)       # (1, C)
    return jnp.concatenate([s[:, None, :], q[:, None, :]], axis=1)


def _matmul_1x1(y, pw_ref):
    """(Bt, H, W, Cin) -> (Bt*H*W, Cout); bf16 MXU inputs, f32 accumulation."""
    C = y.shape[-1]
    y2 = y.reshape(-1, C).astype(jnp.bfloat16)
    return jnp.dot(y2, pw_ref[...], preferred_element_type=jnp.float32)


# --------------------------------------------------------------------------
# Kernels (grid = (B // Bt,), Bt images per step, channels unblocked)
# --------------------------------------------------------------------------
def _stats1_kernel(x_ref, dww_ref, st_ref):
    """Per-step partial (sum, sumsq) of the depthwise output -> BN1 statistics."""
    dw = _depthwise3x3(x_ref, dww_ref)                # (Bt, H, W, Cin)
    st_ref[...] = _partial_stats(dw.reshape(-1, dw.shape[-1]))


def _stats2_kernel(x_ref, dww_ref, s1_ref, t1_ref, pw_ref, st_ref):
    """BN1 + ReLU + 1x1 matmul; emit per-step partial (sum, sumsq) of z -> BN2 statistics."""
    dw = _depthwise3x3(x_ref, dww_ref)
    C = dw.shape[-1]
    y = jnp.maximum(dw * s1_ref[...].reshape(1, 1, 1, C)
                    + t1_ref[...].reshape(1, 1, 1, C), 0.0)
    z = _matmul_1x1(y, pw_ref)
    st_ref[...] = _partial_stats(z)


def _apply_kernel(x_ref, dww_ref, s1_ref, t1_ref, pw_ref, s2_ref, t2_ref, out_ref):
    """Fused forward for one step: DW 3x3 + BN1 + ReLU + 1x1 + BN2 + ReLU, one store per step."""
    dw = _depthwise3x3(x_ref, dww_ref)
    Bt, H, W, C = dw.shape
    y = jnp.maximum(dw * s1_ref[...].reshape(1, 1, 1, C)
                    + t1_ref[...].reshape(1, 1, 1, C), 0.0)
    z = _matmul_1x1(y, pw_ref)
    z = jnp.maximum(z * s2_ref[...] + t2_ref[...], 0.0)
    Cout = z.shape[-1]
    out_ref[...] = z.reshape(Bt, H, W, Cout).astype(out_ref.dtype)


# --------------------------------------------------------------------------
# Wrapper helpers
# --------------------------------------------------------------------------
def _bn_scale_shift(s, q, n, gamma, beta):
    """Fold global (sum, sumsq) into per-channel affine scale/shift (training-mode BN)."""
    mean = s / n
    var = jnp.maximum(q / n - mean * mean, 0.0)        # biased variance, as in BN forward
    scale = gamma.astype(jnp.float32) * jax.lax.rsqrt(var + EPS)
    shift = beta.astype(jnp.float32) - mean * scale
    return scale.reshape(1, -1), shift.reshape(1, -1)


def _vmem_limit_bytes():
    """~3/4 of physical VMEM (48 MiB on v7x, 96 MiB on v5e/v6e); conservative fallback."""
    try:
        cap = int(pltpu.get_tpu_info().vmem_capacity_bytes)
        return max(32 * 1024 * 1024, min(100 * 1024 * 1024, (cap * 3) // 4))
    except Exception:
        return 32 * 1024 * 1024


def _pick_batch_tile(B, H, W, cin, cout, itemsize, budget_bytes):
    """Images per grid step: enough rows to feed the MXU (M = Bt*H*W), block fits the
    VMEM budget, and >=2 grid steps are kept when possible (v7x megacore balance)."""
    def live_bytes(bt):
        m = bt * H * W
        # double-buffered I/O blocks + ~6 live f32 Cin-wide intermediates + f32 z.
        return m * (cin * (2 * itemsize + 6 * 4) + cout * (2 * itemsize + 2 * 4))

    feasible = [d for d in range(1, B + 1) if B % d == 0 and live_bytes(d) <= budget_bytes]
    if not feasible:
        feasible = [1]
    pref = [d for d in feasible if B // d >= 2] or feasible
    big_enough = [d for d in pref if d * H * W >= 512]
    return min(big_enough) if big_enough else max(pref)


# --------------------------------------------------------------------------
# Main entry point
# --------------------------------------------------------------------------
def depthwise_separable(x_nchw, dw_w, g1, b1, pw_w, g2, b2):
    """x_nchw: (B, Cin, H, W); dw_w: (Cin, 3, 3); pw_w: (Cout, Cin). Returns (B, Cout, H, W)."""
    B, Cin, H, W = x_nchw.shape
    Cout = pw_w.shape[0]
    n = B * H * W

    # NCHW -> NHWC (channel on the lane axis).  TODO(synk): keep activations in
    # NHWC between layers to amortize this transpose across the whole network.
    x = jnp.transpose(x_nchw, (0, 2, 3, 1))
    dww = jnp.transpose(dw_w, (1, 2, 0)).reshape(9, Cin).astype(jnp.float32)    # (tap, Cin)
    pww = jnp.transpose(pw_w, (1, 0)).astype(jnp.bfloat16)                      # (Cin, Cout) bf16

    itemsize = x.dtype.itemsize
    x_bytes = x.size * itemsize

    vmem_limit = _vmem_limit_bytes()
    bt = _pick_batch_tile(B, H, W, Cin, Cout, itemsize, budget_bytes=(vmem_limit * 3) // 5)
    steps = B // bt

    # Block specs: Bt images per grid step, channels unblocked; params resident.
    x_spec = pl.BlockSpec((bt, H, W, Cin), lambda b: (b, 0, 0, 0))
    dww_spec = pl.BlockSpec((9, Cin), lambda b: (0, 0))
    pw_spec = pl.BlockSpec((Cin, Cout), lambda b: (0, 0))
    cin_vec = pl.BlockSpec((1, Cin), lambda b: (0, 0))
    cout_vec = pl.BlockSpec((1, Cout), lambda b: (0, 0))

    cp = pltpu.CompilerParams(
        dimension_semantics=("parallel",),            # megacore sharding on v7x
        vmem_limit_bytes=vmem_limit,
    )

    # --- Pass 1: depthwise conv, BN1 partial statistics -------------------
    stats1 = pl.pallas_call(
        _stats1_kernel,
        out_shape=jax.ShapeDtypeStruct((steps, 2, Cin), jnp.float32),
        grid=(steps,),
        in_specs=[x_spec, dww_spec],
        out_specs=pl.BlockSpec((1, 2, Cin), lambda b: (b, 0, 0)),
        compiler_params=cp,
        cost_estimate=pl.CostEstimate(
            flops=int(22 * B * H * W * Cin),
            transcendentals=0,
            bytes_accessed=int(x_bytes + dww.size * 4 + steps * 2 * Cin * 4)),
    )(x, dww)
    scale1, shift1 = _bn_scale_shift(jnp.sum(stats1[:, 0, :], axis=0),
                                     jnp.sum(stats1[:, 1, :], axis=0), n, g1, b1)

    # --- Pass 2: BN1+ReLU, 1x1 matmul, BN2 partial statistics -------------
    stats2 = pl.pallas_call(
        _stats2_kernel,
        out_shape=jax.ShapeDtypeStruct((steps, 2, Cout), jnp.float32),
        grid=(steps,),
        in_specs=[x_spec, dww_spec, cin_vec, cin_vec, pw_spec],
        out_specs=pl.BlockSpec((1, 2, Cout), lambda b: (b, 0, 0)),
        compiler_params=cp,
        cost_estimate=pl.CostEstimate(
            flops=int(B * H * W * (22 * Cin + 2 * Cin * Cout + 4 * Cout)),
            transcendentals=0,
            bytes_accessed=int(x_bytes + dww.size * 4 + pww.size * 2
                               + (2 * Cin + steps * 2 * Cout) * 4)),
    )(x, dww, scale1, shift1, pww)
    scale2, shift2 = _bn_scale_shift(jnp.sum(stats2[:, 0, :], axis=0),
                                     jnp.sum(stats2[:, 1, :], axis=0), n, g2, b2)

    # --- Pass 3: fully fused apply + write output --------------------------
    out_nhwc = pl.pallas_call(
        _apply_kernel,
        out_shape=jax.ShapeDtypeStruct((B, H, W, Cout), x.dtype),
        grid=(steps,),
        in_specs=[x_spec, dww_spec, cin_vec, cin_vec, pw_spec, cout_vec, cout_vec],
        out_specs=pl.BlockSpec((bt, H, W, Cout), lambda b: (b, 0, 0, 0)),
        compiler_params=cp,
        cost_estimate=pl.CostEstimate(
            flops=int(B * H * W * (22 * Cin + 2 * Cin * Cout + 4 * Cout)),
            transcendentals=0,
            bytes_accessed=int(x_bytes + B * H * W * Cout * itemsize
                               + dww.size * 4 + pww.size * 2 + (2 * Cin + 2 * Cout) * 4)),
    )(x, dww, scale1, shift1, pww, scale2, shift2)

    # Back to NCHW to match the PyTorch module's output layout.
    return jnp.transpose(out_nhwc, (0, 3, 1, 2))


# --------------------------------------------------------------------------
# Pure-JAX reference (training-mode BN, all f32) for a correctness check
# --------------------------------------------------------------------------
def _reference(x_nchw, dw_w, g1, b1, pw_w, g2, b2):
    x = jnp.transpose(x_nchw, (0, 2, 3, 1)).astype(jnp.float32)
    B, H, W, Cin = x.shape
    xp = jnp.pad(x, ((0, 0), (1, 1), (1, 1), (0, 0)))
    dww = jnp.transpose(dw_w, (1, 2, 0)).reshape(9, Cin)
    acc = jnp.zeros((B, H, W, Cin), jnp.float32)
    for k in range(9):
        kh, kw = divmod(k, 3)
        acc = acc + xp[:, kh:kh + H, kw:kw + W, :] * dww[k:k + 1, :].reshape(1, 1, 1, Cin)

    def bn_relu(v, g, b):
        c = v.shape[-1]
        flat = v.reshape(-1, c)
        m = jnp.mean(flat, axis=0)
        var = jnp.mean(flat * flat, axis=0) - m * m
        out = (flat - m) * jax.lax.rsqrt(var + EPS) * g + b
        return jnp.maximum(out, 0.0).reshape(v.shape)

    y = bn_relu(acc, g1, b1)
    z = jnp.einsum('bhwc,cd->bhwd', y, jnp.transpose(pw_w, (1, 0)))
    z = bn_relu(z, g2, b2)
    return jnp.transpose(z, (0, 3, 1, 2))


if __name__ == "__main__":
    B, Cin, Cout, H, W = 2, 4, 8, 16, 16

    key = jax.random.PRNGKey(0)
    k1, k2, k3 = jax.random.split(key, 3)

    x = jax.random.normal(k1, (B, Cin, H, W), jnp.float32)

    # Conv weights with PyTorch-style kaiming-uniform bounds.
    bound_dw = 1.0 / (1 * 3 * 3) ** 0.5
    dw_w = jax.random.uniform(k2, (Cin, 3, 3), jnp.float32, -bound_dw, bound_dw)
    bound_pw = 1.0 / (Cin * 1 * 1) ** 0.5
    pw_w = jax.random.uniform(k3, (Cout, Cin), jnp.float32, -bound_pw, bound_pw)

    # BatchNorm affine params at their __init__ defaults.
    g1 = jnp.ones((Cin,), jnp.float32)
    b1 = jnp.zeros((Cin,), jnp.float32)
    g2 = jnp.ones((Cout,), jnp.float32)
    b2 = jnp.zeros((Cout,), jnp.float32)

    out = depthwise_separable(x, dw_w, g1, b1, pw_w, g2, b2)
    jax.block_until_ready(out)

    assert out.shape == (B, Cout, H, W), out.shape
    assert bool(jnp.all(out >= 0.0))  # final ReLU

    ref = _reference(x, dw_w, g1, b1, pw_w, g2, b2)
    err = float(jnp.max(jnp.abs(out - ref)))
    # Tolerance accounts for the bf16 MXU operands in the 1x1 conv (reference is all f32).
    assert err < 5e-2, f"max abs error vs reference: {err}"

    print("KERNEL_OK")
</pallas_src>

<mosaic_0001>
module attributes {stable_mosaic.version = 11 : i64} {
  func.func @_stats1_kernel(%arg0: i32, %arg1: memref<1x16x16x4xf32, #tpu.memory_space<vmem>>, %arg2: memref<9x4xf32, #tpu.memory_space<vmem>>, %arg3: memref<1x2x4xf32, #tpu.memory_space<vmem>>) attributes {dimension_semantics = [#tpu.dimension_semantics<parallel>], iteration_bounds = array<i64: 2>, scalar_prefetch = 0 : i64, scratch_operands = 0 : i64, tpu.core_type = #tpu.core_type<tc>, window_params = [{transform_indices = @transform_0, window_bounds = array<i64: 1, 16, 16, 4>}, {pipeline_mode = #tpu.pipeline_mode<synchronous>, transform_indices = @transform_1, window_bounds = array<i64: 9, 4>}, {transform_indices = @transform_2, window_bounds = array<i64: 1, 2, 4>}]} {
    %c0 = arith.constant 0 : index
    %c0_0 = arith.constant 0 : index
    %c0_1 = arith.constant 0 : index
    %c0_2 = arith.constant 0 : index
    %0 = vector.load %arg1[%c0, %c0_0, %c0_1, %c0_2] : memref<1x16x16x4xf32, #tpu.memory_space<vmem>>, vector<1x16x16x4xf32>
    %c0_3 = arith.constant 0 : index
    %c0_4 = arith.constant 0 : index
    %1 = vector.load %arg2[%c0_3, %c0_4] : memref<9x4xf32, #tpu.memory_space<vmem>>, vector<9x4xf32>
    %cst = arith.constant 0.000000e+00 : f32
    %2 = vector.broadcast %cst : f32 to vector<1x1x16x4xf32>
    %3 = tpu.concatenate %2, %0, %2 in 1 : vector<1x1x16x4xf32>, vector<1x16x16x4xf32>, vector<1x1x16x4xf32> -> vector<1x18x16x4xf32>
    %4 = tpu.iota {dimensions = array<i32: 2>} : vector<1x1x16x1xi32>
    %c1_i32 = arith.constant 1 : i32
    %5 = vector.broadcast %c1_i32 : i32 to vector<1x1x16x1xi32>
    %6 = arith.cmpi sge, %4, %5 : vector<1x1x16x1xi32>
    %7 = arith.extui %6 : vector<1x1x16x1xi1> to vector<1x1x16x1xi32>
    %8 = arith.sitofp %7 : vector<1x1x16x1xi32> to vector<1x1x16x1xf32>
    %c14_i32 = arith.constant 14 : i32
    %9 = vector.broadcast %c14_i32 : i32 to vector<1x1x16x1xi32>
    %10 = arith.cmpi sle, %4, %9 : vector<1x1x16x1xi32>
    %11 = arith.extui %10 : vector<1x1x16x1xi1> to vector<1x1x16x1xi32>
    %12 = arith.sitofp %11 : vector<1x1x16x1xi32> to vector<1x1x16x1xf32>
    %cst_5 = arith.constant 0.000000e+00 : f32
    %13 = vector.broadcast %cst_5 : f32 to vector<1x16x16x4xf32>
    %c1_i32_6 = arith.constant 1 : i32
    %14 = tpu.dynamic_rotate %3 by %c1_i32_6 dim 2 : vector<1x18x16x4xf32>, i32 -> vector<1x18x16x4xf32>
    %15 = vector.broadcast %8 : vector<1x1x16x1xf32> to vector<1x18x16x4xf32>
    %16 = arith.mulf %14, %15 : vector<1x18x16x4xf32>
    %17 = vector.extract_strided_slice %1 {offsets = [0, 0], sizes = [1, 4], strides = [1, 1]} : vector<9x4xf32> to vector<1x4xf32>
    %18 = vector.shape_cast %17 : vector<1x4xf32> to vector<1x1x1x4xf32>
    %19 = vector.extract_strided_slice %16 {offsets = [0, 0, 0, 0], sizes = [1, 16, 16, 4], strides = [1, 1, 1, 1]} : vector<1x18x16x4xf32> to vector<1x16x16x4xf32>
    %20 = vector.broadcast %18 : vector<1x1x1x4xf32> to vector<1x16x16x4xf32>
    %21 = arith.mulf %19, %20 : vector<1x16x16x4xf32>
    %22 = arith.addf %13, %21 : vector<1x16x16x4xf32>
    %23 = vector.extract_strided_slice %1 {offsets = [3, 0], sizes = [1, 4], strides = [1, 1]} : vector<9x4xf32> to vector<1x4xf32>
    %24 = vector.shape_cast %23 : vector<1x4xf32> to vector<1x1x1x4xf32>
    %25 = vector.extract_strided_slice %16 {offsets = [0, 1, 0, 0], sizes = [1, 16, 16, 4], strides = [1, 1, 1, 1]} : vector<1x18x16x4xf32> to vector<1x16x16x4xf32>
    %26 = vector.broadcast %24 : vector<1x1x1x4xf32> to vector<1x16x16x4xf32>
    %27 = arith.mulf %25, %26 : vector<1x16x16x4xf32>
    %28 = arith.addf %22, %27 : vector<1x16x16x4xf32>
    %29 = vector.extract_strided_slice %1 {offsets = [6, 0], sizes = [1, 4], strides = [1, 1]} : vector<9x4xf32> to vector<1x4xf32>
    %30 = vector.shape_cast %29 : vector<1x4xf32> to vector<1x1x1x4xf32>
    %31 = vector.extract_strided_slice %16 {offsets = [0, 2, 0, 0], sizes = [1, 16, 16, 4], strides = [1, 1, 1, 1]} : vector<1x18x16x4xf32> to vector<1x16x16x4xf32>
    %32 = vector.broadcast %30 : vector<1x1x1x4xf32> to vector<1x16x16x4xf32>
    %33 = arith.mulf %31, %32 : vector<1x16x16x4xf32>
    %34 = arith.addf %28, %33 : vector<1x16x16x4xf32>
    %35 = vector.extract_strided_slice %1 {offsets = [1, 0], sizes = [1, 4], strides = [1, 1]} : vector<9x4xf32> to vector<1x4xf32>
    %36 = vector.shape_cast %35 : vector<1x4xf32> to vector<1x1x1x4xf32>
    %37 = vector.extract_strided_slice %3 {offsets = [0, 0, 0, 0], sizes = [1, 16, 16, 4], strides = [1, 1, 1, 1]} : vector<1x18x16x4xf32> to vector<1x16x16x4xf32>
    %38 = vector.broadcast %36 : vector<1x1x1x4xf32> to vector<1x16x16x4xf32>
    %39 = arith.mulf %37, %38 : vector<1x16x16x4xf32>
    %40 = arith.addf %34, %39 : vector<1x16x16x4xf32>
    %41 = vector.extract_strided_slice %1 {offsets = [4, 0], sizes = [1, 4], strides = [1, 1]} : vector<9x4xf32> to vector<1x4xf32>
    %42 = vector.shape_cast %41 : vector<1x4xf32> to vector<1x1x1x4xf32>
    %43 = vector.extract_strided_slice %3 {offsets = [0, 1, 0, 0], sizes = [1, 16, 16, 4], strides = [1, 1, 1, 1]} : vector<1x18x16x4xf32> to vector<1x16x16x4xf32>
    %44 = vector.broadcast %42 : vector<1x1x1x4xf32> to vector<1x16x16x4xf32>
    %45 = arith.mulf %43, %44 : vector<1x16x16x4xf32>
    %46 = arith.addf %40, %45 : vector<1x16x16x4xf32>
    %47 = vector.extract_strided_slice %1 {offsets = [7, 0], sizes = [1, 4], strides = [1, 1]} : vector<9x4xf32> to vector<1x4xf32>
    %48 = vector.shape_cast %47 : vector<1x4xf32> to vector<1x1x1x4xf32>
    %49 = vector.extract_strided_slice %3 {offsets = [0, 2, 0, 0], sizes = [1, 16, 16, 4], strides = [1, 1, 1, 1]} : vector<1x18x16x4xf32> to vector<1x16x16x4xf32>
    %50 = vector.broadcast %48 : vector<1x1x1x4xf32> to vector<1x16x16x4xf32>
    %51 = arith.mulf %49, %50 : vector<1x16x16x4xf32>
    %52 = arith.addf %46, %51 : vector<1x16x16x4xf32>
    %c15_i32 = arith.constant 15 : i32
    %53 = tpu.dynamic_rotate %3 by %c15_i32 dim 2 : vector<1x18x16x4xf32>, i32 -> vector<1x18x16x4xf32>
    %54 = vector.broadcast %12 : vector<1x1x16x1xf32> to vector<1x18x16x4xf32>
    %55 = arith.mulf %53, %54 : vector<1x18x16x4xf32>
    %56 = vector.extract_strided_slice %1 {offsets = [2, 0], sizes = [1, 4], strides = [1, 1]} : vector<9x4xf32> to vector<1x4xf32>
    %57 = vector.shape_cast %56 : vector<1x4xf32> to vector<1x1x1x4xf32>
    %58 = vector.extract_strided_slice %55 {offsets = [0, 0, 0, 0], sizes = [1, 16, 16, 4], strides = [1, 1, 1, 1]} : vector<1x18x16x4xf32> to vector<1x16x16x4xf32>
    %59 = vector.broadcast %57 : vector<1x1x1x4xf32> to vector<1x16x16x4xf32>
    %60 = arith.mulf %58, %59 : vector<1x16x16x4xf32>
    %61 = arith.addf %52, %60 : vector<1x16x16x4xf32>
    %62 = vector.extract_strided_slice %1 {offsets = [5, 0], sizes = [1, 4], strides = [1, 1]} : vector<9x4xf32> to vector<1x4xf32>
    %63 = vector.shape_cast %62 : vector<1x4xf32> to vector<1x1x1x4xf32>
    %64 = vector.extract_strided_slice %55 {offsets = [0, 1, 0, 0], sizes = [1, 16, 16, 4], strides = [1, 1, 1, 1]} : vector<1x18x16x4xf32> to vector<1x16x16x4xf32>
    %65 = vector.broadcast %63 : vector<1x1x1x4xf32> to vector<1x16x16x4xf32>
    %66 = arith.mulf %64, %65 : vector<1x16x16x4xf32>
    %67 = arith.addf %61, %66 : vector<1x16x16x4xf32>
    %68 = vector.extract_strided_slice %1 {offsets = [8, 0], sizes = [1, 4], strides = [1, 1]} : vector<9x4xf32> to vector<1x4xf32>
    %69 = vector.shape_cast %68 : vector<1x4xf32> to vector<1x1x1x4xf32>
    %70 = vector.extract_strided_slice %55 {offsets = [0, 2, 0, 0], sizes = [1, 16, 16, 4], strides = [1, 1, 1, 1]} : vector<1x18x16x4xf32> to vector<1x16x16x4xf32>
    %71 = vector.broadcast %69 : vector<1x1x1x4xf32> to vector<1x16x16x4xf32>
    %72 = arith.mulf %70, %71 : vector<1x16x16x4xf32>
    %73 = arith.addf %67, %72 : vector<1x16x16x4xf32>
    %74 = vector.shape_cast %73 : vector<1x16x16x4xf32> to vector<256x4xf32>
    %cst_7 = arith.constant dense<0.000000e+00> : vector<4xf32>
    %75 = vector.multi_reduction <add>, %74, %cst_7 [0] : vector<256x4xf32> to vector<4xf32>
    %76 = vector.shape_cast %75 : vector<4xf32> to vector<1x4xf32>
    %77 = arith.mulf %74, %74 : vector<256x4xf32>
    %cst_8 = arith.constant dense<0.000000e+00> : vector<4xf32>
    %78 = vector.multi_reduction <add>, %77, %cst_8 [0] : vector<256x4xf32> to vector<4xf32>
    %79 = vector.shape_cast %78 : vector<4xf32> to vector<1x4xf32>
    %80 = vector.shape_cast %76 : vector<1x4xf32> to vector<1x1x4xf32>
    %81 = vector.shape_cast %79 : vector<1x4xf32> to vector<1x1x4xf32>
    %82 = tpu.concatenate %80, %81 in 1 : vector<1x1x4xf32>, vector<1x1x4xf32> -> vector<1x2x4xf32>
    %c0_9 = arith.constant 0 : index
    %c0_10 = arith.constant 0 : index
    %c0_11 = arith.constant 0 : index
    %83 = vector.load %arg3[%c0_9, %c0_10, %c0_11] : memref<1x2x4xf32, #tpu.memory_space<vmem>>, vector<1x2x4xf32>
    tpu.vector_store %arg3[%c0_9, %c0_10, %c0_11], %82 {strides = array<i32>} : memref<1x2x4xf32, #tpu.memory_space<vmem>>, vector<1x2x4xf32>,
    return
  }
  func.func @transform_0(%arg0: i32) -> (i32, i32, i32, i32) {
    %c0_i32 = arith.constant 0 : i32
    %c0_i32_0 = arith.constant 0 : i32
    %c0_i32_1 = arith.constant 0 : i32
    %c0_i32_2 = arith.constant 0 : i32
    return %arg0, %c0_i32, %c0_i32_0, %c0_i32_1 : i32, i32, i32, i32
  }
  func.func @transform_1(%arg0: i32) -> (i32, i32) {
    %c0_i32 = arith.constant 0 : i32
    %c0_i32_0 = arith.constant 0 : i32
    %c0_i32_1 = arith.constant 0 : i32
    return %c0_i32, %c0_i32_0 : i32, i32
  }
  func.func @transform_2(%arg0: i32) -> (i32, i32, i32) {
    %c0_i32 = arith.constant 0 : i32
    %c0_i32_0 = arith.constant 0 : i32
    %c0_i32_1 = arith.constant 0 : i32
    return %arg0, %c0_i32, %c0_i32_0 : i32, i32, i32
  }
}

</mosaic_0001>

<bundles_post_ra>
// kernel: tpu_custom_call.1
= control target key start
LH: loop header
LB: loop body
LE: loop exit
PB: predicated region body
PF: predicated region fallthrough
CT: control target
= control target key end

     0   :  { %7 = vsyncpa [#allocation3], 0  ;;  %s3239_s0 = inlined_call_operand.vmem [shape: f32[2,16,16,4], index: 0, kind: input, shape index: {}]   ;;  %s3240_s1 = inlined_call_operand.vmem [shape: f32[9,4], index: 1, kind: input, shape index: {}]   ;;  %s3241_s2 = inlined_call_operand.hbm [shape: f32[2,2,4], index: 2, kind: output, shape index: {}]  }
   0x1   :  { %9 = vsyncpa [#allocation3 + $0x1], 0  ;;  %s1358_s9 = smov 0   ;;  %s1360_s10 = smov 0  }
   0x2   :  { %s1362_s11 = smov 0   ;;  %s1364_s12 = smov 0  }
   0x3 LB: > { %s1379_s13 = sadd.s32 4294967295, %s1340_s12   ;;  %s1222_s14 = sadd.s32 4294967294, %s1340_s12   ;;  %s1340_s12 = sphi %s1364_s12, %s3877_s12   ;;  %s1336_s11 = sphi %s1362_s11, %s3876_s11   ;;  %s1332_s10 = sphi %s1360_s10, %s3875_s10   ;;  %s1328_s9 = sphi %s1358_s9, %s3874_s9  }
   0x4   : > { %s1383_s15 = sadd.s32 1, %s1340_s12   ;;  %s69_s16 = sadd.s32 1, %s1336_s11 }
   0x5   : > { %s66_s17 = ssub.s32 %s1340_s12, %s1383_s15  ;;  %p79_p0 = scmp.ne.s32.totalorder %s1336_s11, %s1332_s10 }
   0x6   : > { %p67_p1 = scmp.eq.s32.totalorder %s66_s17, 0  ;;  %p80_p2 = scmp.eq.s32.totalorder %s1379_s13, 1 }
   0x7   : > { %p85_p3 = scmp.ne.s32.totalorder %s1332_s10, %s1328_s9  ;;  %p86_p4 = scmp.eq.s32.totalorder %s1222_s14, 1 }
   0x8   : > { %s1394_s18 = scalar_select %p67_p1, %s1336_s11, %s69_s16  }
   0x9   : > { %p1396_p5 = por %p80_p2, %p79_p0  ;;  %p1400_p6 = por %p86_p4, %p85_p3 }
   0xa   : > { %p1225_p7 = scmp.ge.s32.totalorder %s1340_s12, 1  ;;  %p115_p8 = scmp.lt.s32.totalorder %s1340_s12, 3 }
   0xc   : > { %p116_p9 = pnand %p1225_p7, %p115_p8 }
   0xe   : > { %119 = sbr.rel (%p116_p9) target bundleno = 325 (0x145), region = 28 }
  0x13   : > { %p137_p10 = scmp.lt.s32.totalorder %s1379_s13, 1  ;;  %v176_v0 = vlaneseq  ;;  %v1413_v2 = vld [vmem:[%s3240_s1] sm:$0xff]  ;;  %v1342_v4 = vmov 0.0   ;;  %vm972_vm4 = vcmask 31744   ;;  %s134_s4 = sand.u32 1, %s1332_s10   ;;  %vm1143_vm5 = vcmask 1040384  }
  0x14   : > { %3396 = vst [vmem:[#allocation6_spill] sm:$0xff] %v1413_v2  ;;  %v1425_v6 = vperm.slane %v1413_v2, 0  ;;  %v1459_v17 = vperm.slane %v1413_v2, 3  ;;  %s1226_s5 = sshll.u32 %s134_s4, 1  ;;  %s1232_s6 = sshll.u32 %s1379_s13, 1  ;;  %vm1145_vm6 = vcmask 25600  }
  0x15   : > { %s138_s21 = scalar_select %p137_p10, %s1379_s13, 1  ;;  %v1408_v1 = vshrl.u32 %v176_v0, 7 }
  0x16   : > { %v1456_v16 = vmul.f32 0.0, %v1425_v6  ;;  %s1158_s14 = scalar_lea.hbm %s3241_s2, %s1232_s6  ;;  %s136_s16 = scalar_lea.vmem [#allocation2], %s1226_s5 }
  0x17   : > { %3395 = vst [vmem:[#allocation5_spill] sm:$0xff] %v1408_v1  ;;  %s1235_s22 = sshll.u32 %s138_s21, 8  ;;  %vm179_vm0 = vcmp.ge.s32.totalorder %v1408_v1, 1  ;;  %v178_v3 = vadd.s32 8, %v1408_v1  ;;  %vm223_vm2 = vcmp.lt.s32.totalorder %v1408_v1, 1  ;;  %s1160_s17 = sshll.u32 %s136_s16, 4  ;;  %s1161_s17 = int_to_ptr.vmem [resolvable:$true] %s1160_s17 }
  0x18   : > { %s1420_s27 = scalar_lea.vmem %s3239_s0, %s1235_s22  ;;  %v1422_v5 = vsel %vm179_vm0, 1.0, %v1342_v4  ;;  %s1162_s21 = sshll.u32 %s1158_s14, 4  ;;  %s1163_s21 = int_to_ptr.hbm [resolvable:$true] %s1162_s21 }
  0x19   : > { %v1428_v7 = vld [vmem:[%s1420_s27] sm:$0xff]  ;;  %v1431_v8 = vld [vmem:[%s1420_s27 + $0x10] sm:$0xff]  ;;  %vm186_vm1 = vcmp.le.s32.totalorder %v178_v3, 14  ;;  %v1434_v9 = vld [vmem:[%s1420_s27 + $0x8] sm:$0xff]  ;;  %v1443_v12 = vmul.f32 0.0, %v1422_v5  ;;  %s1148_s13 = scalar_lea.sflag [#allocation3], %s134_s4 }
  0x1a   : > { %3397 = vst [vmem:[#allocation7_spill] sm:$0xff] %v1428_v7  ;;  %v1437_v10 = vld [vmem:[%s1420_s27 + $0x18] sm:$0xff]  ;;  %v1440_v11 = vld [vmem:[%s1420_s27 + $0x20] sm:$0xff]  ;;  %v1446_v13 = vld [vmem:[%s1420_s27 + $0x28] sm:$0xff]  ;;  %v1470_v21 = vsel %vm186_vm1, 1.0, %v1342_v4  ;;  %v3246_v22 = vrot.slane %v1428_v7, 7 }
  0x1b   : > { %3398 = vst [vmem:[#allocation8_spill] sm:$0xff] %v1431_v8  ;;  %v1449_v14 = vld [vmem:[%s1420_s27 + $0x30] sm:$0xff]  ;;  %v1452_v15 = vld [vmem:[%s1420_s27 + $0x40] sm:$0xff]  ;;  %v1462_v18 = vld [vmem:[%s1420_s27 + $0x38] sm:$0xff]  ;;  %v3244_v23 = vrot.slane %v1431_v8, 7  ;;  %v3242_v27 = vrot.slane %v1440_v11, 7  ;;  %v1500_v36 = vmul.f32 %v1425_v6, %v1443_v12 }
  0x1c   : > { %3399 = vst [vmem:[#allocation9_spill] sm:$0xff] %v1434_v9  ;;  %v1465_v19 = vld [vmem:[%s1420_s27 + $0x48] sm:$0xff]  ;;  %v1468_v20 = vld [vmem:[%s1420_s27 + $0x50] sm:$0xff]  ;;  %v1475_v24 = vld [vmem:[%s1420_s27 + $0x58] sm:$0xff]  ;;  %v3245_v28 = vrot.slane %v1434_v9, 7  ;;  %v3243_v29 = vrot.slane %v1437_v10, 7 }
  0x1d   : > { %3400 = vst [vmem:[#allocation10_spill] sm:$0xff] %v1437_v10  ;;  %v1478_v25 = vld [vmem:[%s1420_s27 + $0x60] sm:$0xff]  ;;  %v1481_v26 = vld [vmem:[%s1420_s27 + $0x70] sm:$0xff]  ;;  %v1487_v30 = vld [vmem:[%s1420_s27 + $0x68] sm:$0xff]  ;;  %v3247_v33 = vrot.slane %v1449_v14, 7  ;;  %v3259_v34 = vrot.slane %v1452_v15, 7 }
  0x1e   : > { %3401 = vst [vmem:[#allocation11_spill] sm:$0xff] %v1440_v11  ;;  %v1490_v31 = vld [vmem:[%s1420_s27 + $0x78] sm:$0xff]  ;;  %v1493_v32 = vld [vmem:[%s1420_s27 + $0x80] sm:$0xff]  ;;  %v209_v35 = vrot.slane %v1446_v13, 7  ;;  %v1503_v37 = vld [vmem:[%s1420_s27 + $0x88] sm:$0xff]  ;;  %v196_v40 = vrot.slane %v1468_v20, 7  ;;  %v1520_v43 = vsel %vm223_vm2, %v3246_v22, %v3245_v28  ;;  %v1540_v50 = vsel %vm223_vm2, %v3244_v23, %v3243_v29 }
  0x1f   : > { %3402 = vst [vmem:[#allocation12_spill] sm:$0xff] %v1443_v12  ;;  %v1506_v38 = vld [vmem:[%s1420_s27 + $0x90] sm:$0xff]  ;;  %v1509_v39 = vld [vmem:[%s1420_s27 + $0xa0] sm:$0xff]  ;;  %v210_v41 = vrot.slane %v1462_v18, 7  ;;  %v211_v42 = vrot.slane %v1465_v19, 7  ;;  %v1523_v44 = vld [vmem:[%s1420_s27 + $0x98] sm:$0xff] }
  0x20   : > { %3403 = vst [vmem:[#allocation13_spill] sm:$0xff] %v1446_v13  ;;  %v1526_v45 = vld [vmem:[%s1420_s27 + $0xa8] sm:$0xff]  ;;  %v1529_v46 = vld [vmem:[%s1420_s27 + $0xb0] sm:$0xff]  ;;  %v197_v47 = vrot.slane %v1478_v25, 7  ;;  %v198_v48 = vrot.slane %v1481_v26, 7  ;;  %v212_v49 = vrot.slane %v1475_v24, 7  ;;  %v1558_v57 = vsel %vm223_vm2, %v3242_v27, %v209_v35 }
  0x21   : > { %3404 = vst [vmem:[#allocation14_spill] sm:$0xff] %v1449_v14  ;;  %v1543_v51 = vld [vmem:[%s1420_s27 + $0xb8] sm:$0xff]  ;;  %v1546_v52 = vld [vmem:[%s1420_s27 + $0xc0] sm:$0xff]  ;;  %v1549_v53 = vld [vmem:[%s1420_s27 + $0xd0] sm:$0xff]  ;;  %v199_v54 = vrot.slane %v1493_v32, 7  ;;  %v213_v55 = vrot.slane %v1487_v30, 7  ;;  %v1576_v0 = vsel %vm223_vm2, %v3247_v33, %v210_v41  ;;  %v1594_v22 = vsel %vm223_vm2, %v3259_v34, %v211_v42 }
  0x22   : > { %3405 = vst [vmem:[#allocation15_spill] sm:$0xff] %v1452_v15  ;;  %v214_v56 = vrot.slane %v1490_v31, 7  ;;  %v1561_v58 = vld [vmem:[%s1420_s27 + $0xc8] sm:$0xff]  ;;  %v1564_v59 = vld [vmem:[%s1420_s27 + $0xd8] sm:$0xff]  ;;  %v1567_v60 = vld [vmem:[%s1420_s27 + $0xe0] sm:$0xff]  ;;  %v200_v61 = vrot.slane %v1506_v38, 7 }
  0x23   : > { %3406 = vst [vmem:[#allocation16_spill] sm:$0xff] %v1462_v18  ;;  %v201_v62 = vrot.slane %v1509_v39, 7  ;;  %v215_v63 = vrot.slane %v1503_v37, 7  ;;  %v1579_v3 = vld [vmem:[%s1420_s27 + $0xe8] sm:$0xff]  ;;  %v1582_v4 = vld [vmem:[%s1420_s27 + $0xf0] sm:$0xff]  ;;  %v1585_v27 = vld [vmem:[%s1420_s27 + $0xf8] sm:$0xff]  ;;  %v1608_v34 = vsel %vm223_vm2, %v197_v47, %v213_v55 }
  0x24   : > { %3407 = vst [vmem:[#allocation17_spill] sm:$0xff] %v1465_v19  ;;  %v202_v29 = vrot.slane %v1529_v46, 7  ;;  %v216_v23 = vrot.slane %v1523_v44, 7  ;;  %v217_v28 = vrot.slane %v1526_v45, 7  ;;  %v203_v33 = vrot.slane %v1546_v52, 7  ;;  %s1292_s22 = sshra.s32 %s1163_s21, 4  ;;  %s1293_s22 = int_to_ptr.hbm [resolvable:$true] %s1292_s22 }
  0x25   : > { %3408 = vst [vmem:[#allocation18_spill] sm:$0xff] %v1468_v20  ;;  %v3448_v20 = vrot.slane %v1437_v10, 7  ;;  %v3449_v18 = vrot.slane %v1440_v11, 7  ;;  %v3450_v12 = vrot.slane %v1449_v14, 7  ;;  %s1294_s23 = scalar_lea.hbm %s1293_s22, 2  ;;  %s1298_s26 = scalar_lea.hbm %s3241_s2, 4 }
  0x26   : > { %3409 = vst [vmem:[#allocation19_spill] sm:$0xff] %v1470_v21  ;;  %v204_v21 = vrot.slane %v1549_v53, 7  ;;  %p1295_p11 = scmp.ne.s32.totalorder %s1293_s22, %s1294_s23  ;;  %p1299_p0 = scmp.lt.s32.totalorder %s1293_s22, %s3241_s2 }
  0x27   : > { %3410 = vst [vmem:[#allocation20_spill] sm:$0xff] %v1475_v24  ;;  %v3447_v24 = vrot.slane %v1431_v8, 7  ;;  %v242_v13 = vsel %vm223_vm2, %v209_v35, %v3449_v18  ;;  %v248_v18 = vsel %vm223_vm2, %v215_v63, %v199_v54  ;;  %v250_v35 = vsel %vm223_vm2, %v217_v28, %v201_v62  ;;  %p1300_p1 = scmp.lt.s32.totalorder %s1298_s26, %s1294_s23 }
  0x28   : > { %3411 = vst [vmem:[#allocation21_spill] sm:$0xff] %v1478_v25  ;;  %p1296_p12 = pnand %p1295_p11, %p1396_p5 }
  0x29   : > { %3412 = vst [vmem:[#allocation22_spill] sm:$0xff] %v1481_v26  ;;  %v3445_v26 = vrot.slane %v1428_v7, 7  ;;  %v241_v19 = vsel %vm223_vm2, %v3448_v20, %v3447_v24  ;;  %v3451_v7 = vrot.slane %v1452_v15, 7  ;;  %v246_v20 = vsel %vm223_vm2, %v213_v55, %v197_v47  ;;  %p1301_p2 = por %p1300_p1, %p1299_p0 }
  0x2a   : > { %3413 = vst [vmem:[#allocation23_spill] sm:$0xff] %v1487_v30  ;;  %v3446_v30 = vrot.slane %v1434_v9, 7  ;;  %v243_v9 = vsel %vm223_vm2, %v210_v41, %v3450_v12  ;;  %v247_v24 = vsel %vm223_vm2, %v214_v56, %v198_v48  ;;  %v249_v12 = vsel %vm223_vm2, %v216_v23, %v200_v61  ;;  %p1297_p13 = pneg %p1296_p12 }
  0x2b   : > { %3414 = vst [vmem:[#allocation24_spill] sm:$0xff] %v1490_v31  ;;  %v1754_v55 = vmul.f32 %v1425_v6, %v1540_v50 }
  0x2c   : > { %3415 = vst [vmem:[#allocation25_spill] sm:$0xff] %v1493_v32  ;;  %v240_v25 = vsel %vm223_vm2, %v3446_v30, %v3445_v26  ;;  %v244_v26 = vsel %vm223_vm2, %v211_v42, %v3451_v7  ;;  %v245_v30 = vsel %vm223_vm2, %v212_v49, %v196_v40  ;;  %p1302_p3 = pnand %p1301_p2, %p1297_p13 }
  0x2d   : > { %3416 = vst [vmem:[#allocation26_spill] sm:$0xff] %v1503_v37  ;;  %v1615_v37 = vsel %vm223_vm2, %v198_v48, %v214_v56  ;;  %v1697_v48 = vmul.f32 %v1422_v5, %v241_v19  ;;  %v1718_v19 = vmul.f32 %v1422_v5, %v248_v18  ;;  %v1794_v18 = vmul.f32 %v1425_v6, %v1608_v34 }
  0x2e   : > { %3417 = vst [vmem:[#allocation27_spill] sm:$0xff] %v1506_v38  ;;  %v1601_v38 = vsel %vm223_vm2, %v196_v40, %v212_v49 }
  0x2f   : > { %3418 = vst [vmem:[#allocation28_spill] sm:$0xff] %v1509_v39  ;;  %v218_v39 = vrot.slane %v1543_v51, 7 }
  0x30   : > { %3419 = vst [vmem:[#allocation29_spill] sm:$0xff] %v1523_v44  ;;  %v220_v44 = vrot.slane %v1564_v59, 7 }
  0x31   : > { %3420 = vst [vmem:[#allocation30_spill] sm:$0xff] %v1526_v45  ;;  %v219_v45 = vrot.slane %v1561_v58, 7  ;;  %v251_v7 = vsel %vm223_vm2, %v218_v39, %v202_v29 }
  0x32   : > { %3421 = vst [vmem:[#allocation31_spill] sm:$0xff] %v1529_v46  ;;  %v205_v46 = vrot.slane %v1567_v60, 7  ;;  %v253_v41 = vsel %vm223_vm2, %v220_v44, %v204_v21 }
  0x33   : > { %3422 = vst [vmem:[#allocation32_spill] sm:$0xff] %v1540_v50  ;;  %v252_v40 = vsel %vm223_vm2, %v219_v45, %v203_v33 }
  0x34   : > { %3423 = vst [vmem:[#allocation33_spill] sm:$0xff] %v1543_v51  ;;  %v222_v51 = vrot.slane %v1585_v27, 7 }
  0x35   : > { %3424 = vst [vmem:[#allocation34_spill] sm:$0xff] %v1546_v52  ;;  %v206_v52 = vrot.slane %v1582_v4, 7 }
  0x36   : > { %3425 = vst [vmem:[#allocation35_spill] sm:$0xff] %v1549_v53  ;;  %v221_v53 = vrot.slane %v1579_v3, 7 }
  0x37   : > { %3426 = vst [vmem:[#allocation36_spill] sm:$0xff] %v1558_v57  ;;  %v1647_v31 = vsel %vm223_vm2, %v206_v52, %v222_v51  ;;  %v255_v47 = vsel %vm223_vm2, %v222_v51, %v206_v52 }
  0x38   : > { %3427 = vst [vmem:[#allocation37_spill] sm:$0xff] %v1561_v58  ;;  %v1627_v58 = vsel %vm223_vm2, %v201_v62, %v217_v28  ;;  %v1643_v32 = vsel %vm223_vm2, %v205_v46, %v221_v53  ;;  %v254_v42 = vsel %vm223_vm2, %v221_v53, %v205_v46  ;;  %v1700_v28 = vmul.f32 %v1422_v5, %v242_v13 }
  0x39   : > { %3428 = vst [vmem:[#allocation38_spill] sm:$0xff] %v1564_v59  ;;  %v1623_v59 = vsel %vm223_vm2, %v200_v61, %v216_v23  ;;  %v258_v23 = vmul.f32 %v1422_v5, %v240_v25  ;;  %v1715_v25 = vmul.f32 %v1422_v5, %v247_v24  ;;  %v1721_v13 = vmul.f32 %v1422_v5, %v249_v12 }
  0x3a   : > { %3429 = vst [vmem:[#allocation39_spill] sm:$0xff] %v1567_v60  ;;  %v1619_v60 = vsel %vm223_vm2, %v199_v54, %v215_v63  ;;  %v1733_v46 = vmul.f32 %v1422_v5, %v253_v41  ;;  %v1736_v49 = vmul.f32 %v1422_v5, %v254_v42  ;;  %v1739_v51 = vmul.f32 %v1422_v5, %v255_v47 }
  0x3b   : > { %3430 = vst [vmem:[#allocation40_spill] sm:$0xff] %v1576_v0  ;;  %v1742_v52 = vmul.f32 %v1425_v6, %v258_v23  ;;  %v1746_v53 = vmul.f32 %v1425_v6, %v1520_v43  ;;  %v1750_v54 = vmul.f32 %v1425_v6, %v1697_v48  ;;  %v1758_v56 = vmul.f32 %v1425_v6, %v1700_v28 }
  0x3c   : > { %3431 = vst [vmem:[#allocation41_spill] sm:$0xff] %v1579_v3  ;;  %v1639_v3 = vsel %vm223_vm2, %v204_v21, %v220_v44  ;;  %v1709_v21 = vmul.f32 %v1422_v5, %v245_v30  ;;  %v1727_v44 = vmul.f32 %v1422_v5, %v251_v7  ;;  %v1770_v62 = vmul.f32 %v1425_v6, %v1576_v0 }
  0x3d   : > { %3432 = vst [vmem:[#allocation42_spill] sm:$0xff] %v1582_v4  ;;  %v1631_v4 = vsel %vm223_vm2, %v202_v29, %v218_v39  ;;  %v1703_v29 = vmul.f32 %v1422_v5, %v243_v9  ;;  %v1712_v39 = vmul.f32 %v1422_v5, %v246_v20  ;;  %v1724_v9 = vmul.f32 %v1422_v5, %v250_v35 }
  0x3e   : > { %3433 = vst [vmem:[#allocation43_spill] sm:$0xff] %v1585_v27  ;;  %v1635_v27 = vsel %vm223_vm2, %v203_v33, %v219_v45  ;;  %v1706_v33 = vmul.f32 %v1422_v5, %v244_v26  ;;  %v1730_v45 = vmul.f32 %v1422_v5, %v252_v40  ;;  %v1762_v5 = vmul.f32 %v1425_v6, %v1558_v57 }
  0x3f   : > { %3434 = vst [vmem:[#allocation44_spill] sm:$0xff] %v1594_v22  ;;  %v1766_v61 = vmul.f32 %v1425_v6, %v1703_v29  ;;  %v1778_v26 = vmul.f32 %v1425_v6, %v1594_v22  ;;  %v1782_v30 = vmul.f32 %v1425_v6, %v1709_v21  ;;  %v1786_v20 = vmul.f32 %v1425_v6, %v1601_v38 }
  0x40   : > { %3435 = vst [vmem:[#allocation45_spill] sm:$0xff] %v1601_v38  ;;  %v1774_v63 = vmul.f32 %v1425_v6, %v1706_v33  ;;  %v1790_v24 = vmul.f32 %v1425_v6, %v1712_v39  ;;  %v1798_v12 = vmul.f32 %v1425_v6, %v1715_v25  ;;  %v1802_v35 = vmul.f32 %v1425_v6, %v1615_v37 }
  0x41   : > { %3436 = vst [vmem:[#allocation46_spill] sm:$0xff] %v1608_v34  ;;  %v1806_v7 = vmul.f32 %v1425_v6, %v1718_v19  ;;  %v1810_v40 = vmul.f32 %v1425_v6, %v1619_v60  ;;  %v1814_v41 = vmul.f32 %v1425_v6, %v1721_v13  ;;  %v1818_v42 = vmul.f32 %v1425_v6, %v1623_v59 }
  0x42   : > { %3437 = vst [vmem:[#allocation47_spill] sm:$0xff] %v1615_v37  ;;  %v1822_v47 = vmul.f32 %v1425_v6, %v1724_v9  ;;  %v1826_v1 = vmul.f32 %v1425_v6, %v1627_v58  ;;  %v1830_v15 = vmul.f32 %v1425_v6, %v1727_v44  ;;  %v1834_v14 = vmul.f32 %v1425_v6, %v1631_v4 }
  0x43   : > { %3438 = vst [vmem:[#allocation48_spill] sm:$0xff] %v1619_v60  ;;  %v1838_v11 = vmul.f32 %v1425_v6, %v1730_v45  ;;  %v1842_v10 = vmul.f32 %v1425_v6, %v1635_v27  ;;  %v1846_v8 = vmul.f32 %v1425_v6, %v1733_v46 }
  0x44   : > { %3439 = vst [vmem:[#allocation49_spill] sm:$0xff] %v1623_v59 }
  0x45   : > { %3440 = vst [vmem:[#allocation50_spill] sm:$0xff] %v1627_v58 }
  0x46   : > { %3441 = vst [vmem:[#allocation51_spill] sm:$0xff] %v1631_v4 }
  0x47   : > { %3442 = vst [vmem:[#allocation52_spill] sm:$0xff] %v1635_v27 }
  0x48   : > { %3443 = vst [vmem:[#allocation53_spill] sm:$0xff] %v1639_v3 }
  0x49   : > { %3444 = vst [vmem:[#allocation54_spill] sm:$0xff] %v1643_v32 }
  0x4a   : > { %3452 = vst [vmem:[#allocation55_spill] sm:$0xff] %v1697_v48 }
  0x4b   : > { %3453 = vst [vmem:[#allocation56_spill] sm:$0xff] %v1700_v28 }
  0x4c   : > { %3454 = vst [vmem:[#allocation57_spill] sm:$0xff] %v1703_v29 }
  0x4d   : > { %3455 = vst [vmem:[#allocation58_spill] sm:$0xff] %v1706_v33 }
  0x4e   : > { %3456 = vst [vmem:[#allocation59_spill] sm:$0xff] %v1709_v21 }
  0x4f   : > { %3457 = vst [vmem:[#allocation60_spill] sm:$0xff] %v1712_v39 }
  0x50   : > { %3458 = vst [vmem:[#allocation61_spill] sm:$0xff] %v1715_v25 }
  0x51   : > { %3459 = vst [vmem:[#allocation62_spill] sm:$0xff] %v1718_v19 }
  0x52   : > { %3460 = vst [vmem:[#allocation63_spill] sm:$0xff] %v1721_v13 }
  0x53   : > { %3461 = vst [vmem:[#allocation64_spill] sm:$0xff] %v1724_v9 }
  0x54   : > { %3462 = vst [vmem:[#allocation65_spill] sm:$0xff] %v1727_v44 }
  0x55   : > { %3463 = vst [vmem:[#allocation66_spill] sm:$0xff] %v1730_v45 }
  0x56   : > { %3464 = vst [vmem:[#allocation67_spill] sm:$0xff] %v1733_v46 }
  0x57   : > { %3465 = vst [vmem:[#allocation68_spill] sm:$0xff] %v1736_v49 }
  0x58   : > { %3466 = vst [vmem:[#allocation69_spill] sm:$0xff] %v1739_v51 }
  0x59   : > { %3467 = vst [vmem:[#allocation70_spill] sm:$0xff] %v1822_v47  ;;  %v359_v47 = vmul.f32 %v1459_v17, %v1540_v50  ;;  %v366_v50 = vmul.f32 %v1459_v17, %v1709_v21  ;;  %v373_v21 = vmul.f32 %v1459_v17, %v1619_v60  ;;  %v380_v60 = vmul.f32 %v1459_v17, %v1730_v45 }
  0x5a   : > { %3468 = vst [vmem:[#allocation71_spill] sm:$0xff] %v1826_v1  ;;  %v1850_v1 = vmul.f32 %v1425_v6, %v1639_v3  ;;  %v387_v45 = vmul.f32 %v1459_v17, %v1647_v31 }
  0x5b   : > { %3469 = vst [vmem:[#allocation72_spill] sm:$0xff] %v1830_v15  ;;  %v1854_v15 = vmul.f32 %v1425_v6, %v1736_v49 }
  0x5c   : > { %3470 = vst [vmem:[#allocation73_spill] sm:$0xff] %v1834_v14  ;;  %v1858_v14 = vmul.f32 %v1425_v6, %v1643_v32  ;;  %v362_v6 = vmul.f32 %v1459_v17, %v1703_v29  ;;  %v369_v29 = vmul.f32 %v1459_v17, %v1608_v34  ;;  %v376_v34 = vmul.f32 %v1459_v17, %v1724_v9 }
  0x5d   : > { %3471 = vst [vmem:[#allocation74_spill] sm:$0xff] %v1838_v11  ;;  %v356_v11 = vmul.f32 %v1459_v17, %v258_v23  ;;  %v363_v23 = vmul.f32 %v1459_v17, %v1576_v0  ;;  %v370_v0 = vmul.f32 %v1459_v17, %v1715_v25  ;;  %v377_v25 = vmul.f32 %v1459_v17, %v1627_v58 }
  0x5e   : > { %3472 = vst [vmem:[#allocation75_spill] sm:$0xff] %v1842_v10  ;;  %v357_v10 = vmul.f32 %v1459_v17, %v1520_v43  ;;  %v364_v43 = vmul.f32 %v1459_v17, %v1706_v33  ;;  %v371_v33 = vmul.f32 %v1459_v17, %v1615_v37  ;;  %v378_v37 = vmul.f32 %v1459_v17, %v1727_v44 }
  0x5f   : > { %3473 = vst [vmem:[#allocation76_spill] sm:$0xff] %v1846_v8  ;;  %v358_v8 = vmul.f32 %v1459_v17, %v1697_v48  ;;  %v365_v48 = vmul.f32 %v1459_v17, %v1594_v22  ;;  %v372_v22 = vmul.f32 %v1459_v17, %v1718_v19  ;;  %v379_v19 = vmul.f32 %v1459_v17, %v1631_v4 }
  0x60   : > { %3474 = vst [vmem:[#allocation77_spill] sm:$0xff] %v1850_v1  ;;  %v360_v1 = vmul.f32 %v1459_v17, %v1700_v28  ;;  %v367_v28 = vmul.f32 %v1459_v17, %v1601_v38  ;;  %v374_v38 = vmul.f32 %v1459_v17, %v1721_v13  ;;  %v381_v13 = vmul.f32 %v1459_v17, %v1635_v27 }
  0x61   : > { %3475 = vst [vmem:[#allocation78_spill] sm:$0xff] %v1854_v15  ;;  %v361_v15 = vmul.f32 %v1459_v17, %v1558_v57  ;;  %v368_v57 = vmul.f32 %v1459_v17, %v1712_v39  ;;  %v375_v39 = vmul.f32 %v1459_v17, %v1623_v59  ;;  %v382_v59 = vmul.f32 %v1459_v17, %v1733_v46 }
  0x62   : > { %v383_v9 = vmul.f32 %v1459_v17, %v1639_v3  ;;  %v384_v58 = vmul.f32 %v1459_v17, %v1736_v49  ;;  %v385_v44 = vmul.f32 %v1459_v17, %v1643_v32  ;;  %v386_v4 = vmul.f32 %v1459_v17, %v1739_v51 }
  0x63   : > { %v1924_v27 = vadd.f32 %v356_v11, %v1500_v36  ;;  %v1927_v46 = vadd.f32 %v357_v10, %v1456_v16  ;;  %v1930_v3 = vadd.f32 %v358_v8, %v1742_v52  ;;  %v1933_v49 = vadd.f32 %v359_v47, %v1746_v53  ;;  %v3505_v47 = vld [vmem:[#allocation44_spill] sm:$0xff] }
  0x64   : > { %v1936_v32 = vadd.f32 %v360_v1, %v1750_v54  ;;  %v1939_v51 = vadd.f32 %v361_v15, %v1754_v55  ;;  %v1942_v17 = vadd.f32 %v362_v6, %v1758_v56  ;;  %v1945_v11 = vadd.f32 %v363_v23, %v1762_v5  ;;  %v3477_v54 = vld [vmem:[#allocation70_spill] sm:$0xff]  ;;  %v3479_v55 = vld [vmem:[#allocation71_spill] sm:$0xff]  ;;  %v3481_v56 = vld [vmem:[#allocation72_spill] sm:$0xff] }
  0x65   : > { %v1948_v10 = vadd.f32 %v364_v43, %v1766_v61  ;;  %v1951_v8 = vadd.f32 %v365_v48, %v1770_v62  ;;  %v1954_v16 = vadd.f32 %v366_v50, %v1774_v63  ;;  %v1957_v1 = vadd.f32 %v367_v28, %v1778_v26  ;;  %v3483_v5 = vld [vmem:[#allocation73_spill] sm:$0xff]  ;;  %v3485_v61 = vld [vmem:[#allocation74_spill] sm:$0xff]  ;;  %v3487_v62 = vld [vmem:[#allocation75_spill] sm:$0xff] }
  0x66   : > { %v1960_v15 = vadd.f32 %v368_v57, %v1782_v30  ;;  %v1963_v36 = vadd.f32 %v369_v29, %v1786_v20  ;;  %v1966_v52 = vadd.f32 %v370_v0, %v1790_v24  ;;  %v1969_v53 = vadd.f32 %v371_v33, %v1794_v18  ;;  %v3498_v18 = vld [vmem:[#allocation32_spill] sm:$0xff]  ;;  %v3506_v23 = vld [vmem:[#allocation59_spill] sm:$0xff] }
  0x67   : > { %v1972_v48 = vadd.f32 %v372_v22, %v1798_v12  ;;  %v1975_v50 = vadd.f32 %v373_v21, %v1802_v35  ;;  %v1978_v28 = vadd.f32 %v374_v38, %v1806_v7  ;;  %v1981_v57 = vadd.f32 %v375_v39, %v1810_v40  ;;  %v3499_v12 = vld [vmem:[#allocation56_spill] sm:$0xff]  ;;  %v3502_v40 = vld [vmem:[#allocation57_spill] sm:$0xff] }
  0x68   : > { %v1984_v29 = vadd.f32 %v376_v34, %v1814_v41  ;;  %v420_v0 = vperm.slane %v1413_v2, 6  ;;  %v1988_v33 = vadd.f32 %v377_v25, %v1818_v42  ;;  %v1991_v22 = vadd.f32 %v378_v37, %v3477_v54  ;;  %v3489_v25 = vld [vmem:[#allocation76_spill] sm:$0xff]  ;;  %v3491_v37 = vld [vmem:[#allocation77_spill] sm:$0xff] }
  0x69   : > { %v1994_v21 = vadd.f32 %v379_v19, %v3479_v55  ;;  %v1997_v38 = vadd.f32 %v380_v60, %v3481_v56  ;;  %v2000_v39 = vadd.f32 %v381_v13, %v3483_v5  ;;  %v2003_v34 = vadd.f32 %v382_v59, %v3485_v61  ;;  %v3493_v19 = vld [vmem:[#allocation78_spill] sm:$0xff]  ;;  %v3497_v59 = vld [vmem:[#allocation55_spill] sm:$0xff]  ;;  %v3503_v41 = vld [vmem:[#allocation40_spill] sm:$0xff] }
  0x6a   : > { %3476 = vst [vmem:[#allocation79_spill] sm:$0xff] %v1988_v33  ;;  %v2006_v63 = vadd.f32 %v383_v9, %v3487_v62  ;;  %v2009_v26 = vadd.f32 %v384_v58, %v3489_v25  ;;  %v2012_v30 = vadd.f32 %v385_v44, %v3491_v37  ;;  %v2015_v20 = vadd.f32 %v386_v4, %v3493_v19  ;;  %v3501_v44 = vld [vmem:[#allocation36_spill] sm:$0xff]  ;;  %v3507_v54 = vld [vmem:[#allocation45_spill] sm:$0xff]  ;;  %v3509_v61 = vld [vmem:[#allocation46_spill] sm:$0xff] }
  0x6b   : > { %3478 = vst [vmem:[#allocation70_spill] sm:$0xff] %v1991_v22  ;;  %v2018_v60 = vadd.f32 %v387_v45, %v1858_v14  ;;  %v2021_v13 = vperm.slane %v1413_v2, 1  ;;  %v421_v24 = vmul.f32 %v420_v0, %v3497_v59  ;;  %v422_v9 = vmul.f32 %v420_v0, %v3498_v18  ;;  %v3504_v14 = vld [vmem:[#allocation58_spill] sm:$0xff]  ;;  %v3508_v56 = vld [vmem:[#allocation60_spill] sm:$0xff]  ;;  %v3510_v25 = vld [vmem:[#allocation61_spill] sm:$0xff] }
  0x6c   : > { %3480 = vst [vmem:[#allocation71_spill] sm:$0xff] %v1994_v21  ;;  %v423_v35 = vmul.f32 %v420_v0, %v3499_v12  ;;  %v2027_v58 = vperm.slane %v1413_v2, 4  ;;  %v424_v7 = vmul.f32 %v420_v0, %v3501_v44  ;;  %v425_v4 = vmul.f32 %v420_v0, %v3502_v40  ;;  %v3511_v19 = vld [vmem:[#allocation47_spill] sm:$0xff]  ;;  %v3512_v18 = vld [vmem:[#allocation62_spill] sm:$0xff]  ;;  %v3513_v44 = vld [vmem:[#allocation48_spill] sm:$0xff] }
  0x6d   : > { %3482 = vst [vmem:[#allocation72_spill] sm:$0xff] %v1997_v38  ;;  %v426_v42 = vmul.f32 %v420_v0, %v3503_v41  ;;  %v427_v45 = vmul.f32 %v420_v0, %v3504_v14  ;;  %v428_v6 = vmul.f32 %v420_v0, %v3505_v47  ;;  %v429_v43 = vmul.f32 %v420_v0, %v3506_v23  ;;  %v3514_v41 = vld [vmem:[#allocation63_spill] sm:$0xff]  ;;  %v3515_v2 = vld [vmem:[#allocation49_spill] sm:$0xff]  ;;  %v3525_v38 = vld [vmem:[#allocation54_spill] sm:$0xff] }
  0x6e   : > { %3484 = vst [vmem:[#allocation73_spill] sm:$0xff] %v2000_v39  ;;  %v430_v55 = vmul.f32 %v420_v0, %v3507_v54  ;;  %v431_v5 = vmul.f32 %v420_v0, %v3508_v56  ;;  %v432_v62 = vmul.f32 %v420_v0, %v3509_v61  ;;  %v433_v37 = vmul.f32 %v420_v0, %v3510_v25  ;;  %v3524_v39 = vld [vmem:[#allocation68_spill] sm:$0xff]  ;;  %v3526_v21 = vld [vmem:[#allocation69_spill] sm:$0xff] }
  0x6f   : > { %3486 = vst [vmem:[#allocation74_spill] sm:$0xff] %v2003_v34  ;;  %v434_v59 = vmul.f32 %v420_v0, %v3511_v19  ;;  %v435_v12 = vmul.f32 %v420_v0, %v3512_v18  ;;  %v436_v40 = vmul.f32 %v420_v0, %v3513_v44  ;;  %v437_v14 = vmul.f32 %v420_v0, %v3514_v41  ;;  %v3523_v34 = vld [vmem:[#allocation53_spill] sm:$0xff]  ;;  %v3527_v22 = vld [vmem:[#allocation12_spill] sm:$0xff] }
  0x70   : > { %3488 = vst [vmem:[#allocation75_spill] sm:$0xff] %v2006_v63  ;;  %v438_v47 = vmul.f32 %v420_v0, %v3515_v2  ;;  %v3522_v63 = vld [vmem:[#allocation67_spill] sm:$0xff]  ;;  %v446_v44 = vmul.f32 %v420_v0, %v3523_v34  ;;  %v447_v41 = vmul.f32 %v420_v0, %v3524_v39  ;;  %v448_v2 = vmul.f32 %v420_v0, %v3525_v38 }
  0x71   : > { %3490 = vst [vmem:[#allocation76_spill] sm:$0xff] %v2009_v26  ;;  %v3521_v26 = vld [vmem:[#allocation52_spill] sm:$0xff]  ;;  %v445_v18 = vmul.f32 %v420_v0, %v3522_v63  ;;  %v452_v33 = vmul.f32 0.0, %v420_v0  ;;  %v2064_v63 = vadd.f32 %v423_v35, %v1930_v3  ;;  %v2067_v39 = vadd.f32 %v424_v7, %v1933_v49 }
  0x72   : > { %3492 = vst [vmem:[#allocation77_spill] sm:$0xff] %v2012_v30  ;;  %v3520_v30 = vld [vmem:[#allocation66_spill] sm:$0xff]  ;;  %v444_v19 = vmul.f32 %v420_v0, %v3521_v26  ;;  %v2061_v26 = vadd.f32 %v422_v9, %v1927_v46  ;;  %v2070_v38 = vadd.f32 %v425_v4, %v1936_v32  ;;  %v2082_v46 = vadd.f32 %v429_v43, %v1948_v10 }
  0x73   : > { %3494 = vst [vmem:[#allocation78_spill] sm:$0xff] %v2015_v20  ;;  %v3519_v20 = vld [vmem:[#allocation51_spill] sm:$0xff]  ;;  %v443_v25 = vmul.f32 %v420_v0, %v3520_v30  ;;  %v2085_v3 = vadd.f32 %v430_v55, %v1951_v8  ;;  %v2088_v49 = vadd.f32 %v431_v5, %v1954_v16  ;;  %v2091_v32 = vadd.f32 %v432_v62, %v1957_v1 }
  0x74   : > { %3495 = vst [vmem:[#allocation80_spill] sm:$0xff] %v2018_v60  ;;  %v3518_v60 = vld [vmem:[#allocation65_spill] sm:$0xff]  ;;  %v442_v61 = vmul.f32 %v420_v0, %v3519_v20  ;;  %v2058_v20 = vadd.f32 %v421_v24, %v1924_v27  ;;  %v2079_v27 = vadd.f32 %v428_v6, %v1945_v11  ;;  %v2100_v11 = vadd.f32 %v435_v12, %v1966_v52  ;;  %v3528_v52 = vld [vmem:[#allocation79_spill] sm:$0xff] }
  0x75   : > { %3496 = vst [vmem:[#allocation81_spill] sm:$0xff] %v2021_v13  ;;  %v3517_v13 = vld [vmem:[#allocation50_spill] sm:$0xff]  ;;  %v441_v56 = vmul.f32 %v420_v0, %v3518_v60  ;;  %v451_v60 = vmul.f32 %v420_v0, %v3527_v22  ;;  %v2103_v10 = vadd.f32 %v436_v40, %v1969_v53  ;;  %v2106_v8 = vadd.f32 %v437_v14, %v1972_v48  ;;  %v3530_v48 = vld [vmem:[#allocation71_spill] sm:$0xff]  ;;  %v3548_v40 = vld [vmem:[#allocation9_spill] sm:$0xff] }
  0x76   : > { %3500 = vst [vmem:[#allocation55_spill] sm:$0xff] %v2027_v58  ;;  %v3516_v58 = vld [vmem:[#allocation64_spill] sm:$0xff]  ;;  %v440_v54 = vmul.f32 %v420_v0, %v3517_v13  ;;  %v450_v13 = vmul.f32 %v420_v0, %v1647_v31  ;;  %v2073_v31 = vadd.f32 %v426_v42, %v1939_v51  ;;  %v2094_v51 = vadd.f32 %v433_v37, %v1960_v15  ;;  %v3529_v53 = vld [vmem:[#allocation70_spill] sm:$0xff] }
  0x77   : > { %v439_v23 = vmul.f32 %v420_v0, %v3516_v58  ;;  %v449_v58 = vmul.f32 %v420_v0, %v3526_v21  ;;  %v2076_v0 = vadd.f32 %v427_v45, %v1942_v17  ;;  %v2097_v17 = vadd.f32 %v434_v59, %v1963_v36  ;;  %v3547_v59 = vld [vmem:[#allocation7_spill] sm:$0xff] }
  0x78   : > { %v2109_v16 = vadd.f32 %v438_v47, %v1975_v50  ;;  %v2115_v15 = vadd.f32 %v440_v54, %v1981_v57  ;;  %v2118_v36 = vadd.f32 %v441_v56, %v1984_v29  ;;  %v2121_v22 = vadd.f32 %v442_v61, %v3528_v52  ;;  %v3531_v50 = vld [vmem:[#allocation72_spill] sm:$0xff]  ;;  %v3534_v57 = vld [vmem:[#allocation74_spill] sm:$0xff]  ;;  %v3536_v29 = vld [vmem:[#allocation75_spill] sm:$0xff] }
  0x79   : > { %v2112_v1 = vadd.f32 %v439_v23, %v1978_v28  ;;  %v2124_v21 = vadd.f32 %v443_v25, %v3529_v53  ;;  %v2127_v34 = vadd.f32 %v444_v19, %v3530_v48  ;;  %v2130_v30 = vadd.f32 %v445_v18, %v3531_v50  ;;  %v3532_v28 = vld [vmem:[#allocation73_spill] sm:$0xff]  ;;  %v3538_v7 = vld [vmem:[#allocation76_spill] sm:$0xff]  ;;  %v3550_v54 = vld [vmem:[#allocation10_spill] sm:$0xff] }
  0x7a   : > { %v2133_v24 = vadd.f32 %v446_v44, %v3532_v28  ;;  %v2136_v9 = vadd.f32 %v447_v41, %v3534_v57  ;;  %v2139_v35 = vadd.f32 %v448_v2, %v3536_v29  ;;  %v2142_v4 = vadd.f32 %v449_v58, %v3538_v7  ;;  %v3540_v42 = vld [vmem:[#allocation77_spill] sm:$0xff]  ;;  %v3542_v6 = vld [vmem:[#allocation78_spill] sm:$0xff]  ;;  %v3549_v47 = vld [vmem:[#allocation8_spill] sm:$0xff] }
  0x7b   : > { %v2145_v45 = vadd.f32 %v450_v13, %v3540_v42  ;;  %v2148_v43 = vadd.f32 %v451_v60, %v3542_v6  ;;  %v3544_v55 = vld [vmem:[#allocation80_spill] sm:$0xff]  ;;  %v3551_v61 = vld [vmem:[#allocation11_spill] sm:$0xff]  ;;  %v3552_v19 = vld [vmem:[#allocation13_spill] sm:$0xff] }
  0x7c   : > { %3533 = vst [vmem:[#allocation32_spill] sm:$0xff] %v2133_v24  ;;  %v2151_v5 = vadd.f32 %v452_v33, %v3544_v55  ;;  %v3546_v62 = vld [vmem:[#allocation81_spill] sm:$0xff]  ;;  %v3553_v18 = vld [vmem:[#allocation14_spill] sm:$0xff]  ;;  %v3554_v41 = vld [vmem:[#allocation16_spill] sm:$0xff] }
  0x7d   : > { %3535 = vst [vmem:[#allocation56_spill] sm:$0xff] %v2136_v9  ;;  %v486_v37 = vmul.f32 0.0, %v3546_v62  ;;  %v487_v12 = vmul.f32 %v3546_v62, %v3547_v59  ;;  %v488_v14 = vmul.f32 %v3546_v62, %v3548_v40  ;;  %v489_v23 = vmul.f32 %v3546_v62, %v3549_v47  ;;  %v3555_v58 = vld [vmem:[#allocation15_spill] sm:$0xff]  ;;  %v3556_v60 = vld [vmem:[#allocation17_spill] sm:$0xff]  ;;  %v3557_v53 = vld [vmem:[#allocation18_spill] sm:$0xff] }
  0x7e   : > { %3537 = vst [vmem:[#allocation36_spill] sm:$0xff] %v2139_v35  ;;  %v490_v56 = vmul.f32 %v3546_v62, %v3550_v54  ;;  %v491_v25 = vmul.f32 %v3546_v62, %v3551_v61  ;;  %v492_v33 = vmul.f32 %v3546_v62, %v3552_v19  ;;  %v493_v44 = vmul.f32 %v3546_v62, %v3553_v18  ;;  %v3558_v50 = vld [vmem:[#allocation20_spill] sm:$0xff]  ;;  %v3559_v57 = vld [vmem:[#allocation21_spill] sm:$0xff]  ;;  %v3560_v7 = vld [vmem:[#allocation23_spill] sm:$0xff] }
  0x7f   : > { %3539 = vst [vmem:[#allocation57_spill] sm:$0xff] %v2142_v4  ;;  %v494_v2 = vmul.f32 %v3546_v62, %v3554_v41  ;;  %v495_v13 = vmul.f32 %v3546_v62, %v3555_v58  ;;  %v496_v52 = vmul.f32 %v3546_v62, %v3556_v60  ;;  %v497_v48 = vmul.f32 %v3546_v62, %v3557_v53  ;;  %v3561_v6 = vld [vmem:[#allocation22_spill] sm:$0xff]  ;;  %v3562_v41 = vld [vmem:[#allocation24_spill] sm:$0xff]  ;;  %v3563_v18 = vld [vmem:[#allocation25_spill] sm:$0xff] }
  0x80   : > { %3541 = vst [vmem:[#allocation40_spill] sm:$0xff] %v2145_v45  ;;  %v498_v28 = vmul.f32 %v3546_v62, %v3558_v50  ;;  %v499_v29 = vmul.f32 %v3546_v62, %v3559_v57  ;;  %v500_v42 = vmul.f32 %v3546_v62, %v3560_v7  ;;  %v501_v55 = vmul.f32 %v3546_v62, %v3561_v6  ;;  %v3564_v19 = vld [vmem:[#allocation26_spill] sm:$0xff]  ;;  %v3565_v61 = vld [vmem:[#allocation27_spill] sm:$0xff]  ;;  %v3566_v54 = vld [vmem:[#allocation29_spill] sm:$0xff] }
  0x81   : > { %3543 = vst [vmem:[#allocation58_spill] sm:$0xff] %v2148_v43  ;;  %v502_v58 = vmul.f32 %v3546_v62, %v3562_v41  ;;  %v503_v60 = vmul.f32 %v3546_v62, %v3563_v18  ;;  %v504_v53 = vmul.f32 %v3546_v62, %v3564_v19  ;;  %v505_v50 = vmul.f32 %v3546_v62, %v3565_v61  ;;  %v3567_v47 = vld [vmem:[#allocation28_spill] sm:$0xff]  ;;  %v3568_v40 = vld [vmem:[#allocation30_spill] sm:$0xff]  ;;  %v3569_v59 = vld [vmem:[#allocation31_spill] sm:$0xff] }
  0x82   : > { %3545 = vst [vmem:[#allocation44_spill] sm:$0xff] %v2151_v5  ;;  %v506_v57 = vmul.f32 %v3546_v62, %v3566_v54  ;;  %v507_v7 = vmul.f32 %v3546_v62, %v3567_v47  ;;  %v508_v6 = vmul.f32 %v3546_v62, %v3568_v40  ;;  %v509_v41 = vmul.f32 %v3546_v62, %v3569_v59  ;;  %v3570_v5 = vld [vmem:[#allocation33_spill] sm:$0xff]  ;;  %v3571_v43 = vld [vmem:[#allocation34_spill] sm:$0xff]  ;;  %v3573_v4 = vld [vmem:[#allocation35_spill] sm:$0xff] }
  0x83   : > { %v510_v18 = vmul.f32 %v3546_v62, %v3570_v5  ;;  %v511_v19 = vmul.f32 %v3546_v62, %v3571_v43  ;;  %v3572_v45 = vld [vmem:[#allocation37_spill] sm:$0xff]  ;;  %v513_v54 = vmul.f32 %v3546_v62, %v3573_v4  ;;  %v3574_v35 = vld [vmem:[#allocation38_spill] sm:$0xff]  ;;  %v3575_v9 = vld [vmem:[#allocation39_spill] sm:$0xff]  ;;  %v2215_v5 = vadd.f32 %v486_v37, %v2058_v20 }
  0x84   : > { %v512_v61 = vmul.f32 %v3546_v62, %v3572_v45  ;;  %v514_v47 = vmul.f32 %v3546_v62, %v3574_v35  ;;  %v515_v40 = vmul.f32 %v3546_v62, %v3575_v9  ;;  %v3576_v24 = vld [vmem:[#allocation41_spill] sm:$0xff]  ;;  %v2218_v43 = vadd.f32 %v486_v37, %v2061_v26 }
  0x85   : > { %v516_v59 = vmul.f32 %v3546_v62, %v3576_v24  ;;  %v2221_v45 = vadd.f32 %v487_v12, %v2064_v63  ;;  %v2224_v4 = vadd.f32 %v488_v14, %v2067_v39  ;;  %v2227_v35 = vadd.f32 %v489_v23, %v2070_v38 }
  0x86   : > { %v2230_v9 = vadd.f32 %v490_v56, %v2073_v31  ;;  %v2233_v62 = vadd.f32 %v491_v25, %v2076_v0  ;;  %v2236_v20 = vadd.f32 %v492_v33, %v2079_v27  ;;  %v2239_v26 = vadd.f32 %v493_v44, %v2082_v46  ;;  %v3593_v44 = vld [vmem:[#allocation55_spill] sm:$0xff] }
  0x87   : > { %v2242_v63 = vadd.f32 %v494_v2, %v2085_v3  ;;  %v2245_v39 = vadd.f32 %v495_v13, %v2088_v49  ;;  %v2248_v38 = vadd.f32 %v496_v52, %v2091_v32  ;;  %v2251_v31 = vadd.f32 %v497_v48, %v2094_v51  ;;  %v3600_v48 = vld [vmem:[#allocation16_spill] sm:$0xff] }
  0x88   : > { %v2254_v0 = vadd.f32 %v498_v28, %v2097_v17  ;;  %v2257_v27 = vadd.f32 %v499_v29, %v2100_v11  ;;  %v2260_v46 = vadd.f32 %v500_v42, %v2103_v10  ;;  %v2263_v3 = vadd.f32 %v501_v55, %v2106_v8  ;;  %v3601_v28 = vld [vmem:[#allocation15_spill] sm:$0xff]  ;;  %v3602_v29 = vld [vmem:[#allocation17_spill] sm:$0xff]  ;;  %v3603_v42 = vld [vmem:[#allocation18_spill] sm:$0xff] }
  0x89   : > { %v2266_v49 = vadd.f32 %v502_v58, %v2109_v16  ;;  %v2269_v32 = vadd.f32 %v503_v60, %v2112_v1  ;;  %v2272_v51 = vadd.f32 %v504_v53, %v2115_v15  ;;  %v2275_v17 = vadd.f32 %v505_v50, %v2118_v36  ;;  %v3578_v1 = vld [vmem:[#allocation32_spill] sm:$0xff] }
  0x8a   : > { %v2278_v11 = vadd.f32 %v506_v57, %v2121_v22  ;;  %v2281_v10 = vadd.f32 %v507_v7, %v2124_v21  ;;  %v2284_v8 = vadd.f32 %v508_v6, %v2127_v34  ;;  %v2287_v16 = vadd.f32 %v509_v41, %v2130_v30  ;;  %v3580_v15 = vld [vmem:[#allocation56_spill] sm:$0xff]  ;;  %v3584_v22 = vld [vmem:[#allocation57_spill] sm:$0xff]  ;;  %v3588_v34 = vld [vmem:[#allocation58_spill] sm:$0xff] }
  0x8b   : > { %v2290_v37 = vadd.f32 %v510_v18, %v3578_v1  ;;  %v2293_v12 = vadd.f32 %v511_v19, %v3580_v15  ;;  %v3582_v36 = vld [vmem:[#allocation36_spill] sm:$0xff]  ;;  %v2299_v23 = vadd.f32 %v513_v54, %v3584_v22  ;;  %v2305_v25 = vadd.f32 %v515_v40, %v3588_v34  ;;  %v3592_v18 = vld [vmem:[#allocation7_spill] sm:$0xff]  ;;  %v3594_v19 = vld [vmem:[#allocation9_spill] sm:$0xff] }
  0x8c   : > { %3577 = vst [vmem:[#allocation59_spill] sm:$0xff] %v2287_v16  ;;  %v2296_v14 = vadd.f32 %v512_v61, %v3582_v36  ;;  %v3586_v21 = vld [vmem:[#allocation40_spill] sm:$0xff]  ;;  %v550_v41 = vmul.f32 %v3593_v44, %v3592_v18  ;;  %v551_v2 = vmul.f32 %v3593_v44, %v3594_v19  ;;  %v3596_v54 = vld [vmem:[#allocation10_spill] sm:$0xff]  ;;  %v3598_v40 = vld [vmem:[#allocation13_spill] sm:$0xff]  ;;  %v557_v50 = vmul.f32 %v3593_v44, %v3600_v48 }
  0x8d   : > { %3579 = vst [vmem:[#allocation45_spill] sm:$0xff] %v2290_v37  ;;  %v2302_v56 = vadd.f32 %v514_v47, %v3586_v21  ;;  %v3590_v30 = vld [vmem:[#allocation44_spill] sm:$0xff]  ;;  %v553_v13 = vmul.f32 %v3593_v44, %v3596_v54  ;;  %v3597_v47 = vld [vmem:[#allocation11_spill] sm:$0xff]  ;;  %v555_v52 = vmul.f32 %v3593_v44, %v3598_v40  ;;  %v558_v57 = vmul.f32 %v3593_v44, %v3601_v28  ;;  %v3605_v15 = vld [vmem:[#allocation21_spill] sm:$0xff] }
  0x8e   : > { %3581 = vst [vmem:[#allocation60_spill] sm:$0xff] %v2293_v12  ;;  %v2308_v33 = vadd.f32 %v516_v59, %v3590_v30  ;;  %v3595_v61 = vld [vmem:[#allocation8_spill] sm:$0xff]  ;;  %v554_v60 = vmul.f32 %v3593_v44, %v3597_v47  ;;  %v3599_v59 = vld [vmem:[#allocation14_spill] sm:$0xff]  ;;  %v559_v7 = vmul.f32 %v3593_v44, %v3602_v29  ;;  %v560_v6 = vmul.f32 %v3593_v44, %v3603_v42  ;;  %v3606_v22 = vld [vmem:[#allocation23_spill] sm:$0xff] }
  0x8f   : > { %3583 = vst [vmem:[#allocation46_spill] sm:$0xff] %v2296_v14  ;;  %v552_v58 = vmul.f32 %v3593_v44, %v3595_v61  ;;  %v556_v53 = vmul.f32 %v3593_v44, %v3599_v59  ;;  %v3604_v55 = vld [vmem:[#allocation20_spill] sm:$0xff]  ;;  %v562_v36 = vmul.f32 %v3593_v44, %v3605_v15  ;;  %v563_v21 = vmul.f32 %v3593_v44, %v3606_v22  ;;  %v3607_v34 = vld [vmem:[#allocation22_spill] sm:$0xff]  ;;  %v3609_v48 = vld [vmem:[#allocation25_spill] sm:$0xff] }
  0x90   : > { %3585 = vst [vmem:[#allocation61_spill] sm:$0xff] %v2299_v23  ;;  %v561_v1 = vmul.f32 %v3593_v44, %v3604_v55  ;;  %v564_v30 = vmul.f32 %v3593_v44, %v3607_v34  ;;  %v3608_v19 = vld [vmem:[#allocation24_spill] sm:$0xff]  ;;  %v566_v29 = vmul.f32 %v3593_v44, %v3609_v48  ;;  %v3610_v40 = vld [vmem:[#allocation26_spill] sm:$0xff]  ;;  %v3611_v59 = vld [vmem:[#allocation27_spill] sm:$0xff] }
  0x91   : > { %3587 = vst [vmem:[#allocation47_spill] sm:$0xff] %v2302_v56  ;;  %v565_v28 = vmul.f32 %v3593_v44, %v3608_v19  ;;  %v567_v42 = vmul.f32 %v3593_v44, %v3610_v40  ;;  %v568_v55 = vmul.f32 %v3593_v44, %v3611_v59  ;;  %v3612_v54 = vld [vmem:[#allocation29_spill] sm:$0xff]  ;;  %v3613_v47 = vld [vmem:[#allocation28_spill] sm:$0xff]  ;;  %v3614_v61 = vld [vmem:[#allocation30_spill] sm:$0xff] }
  0x92   : > { %3589 = vst [vmem:[#allocation62_spill] sm:$0xff] %v2305_v25  ;;  %v569_v15 = vmul.f32 %v3593_v44, %v3612_v54  ;;  %v570_v22 = vmul.f32 %v3593_v44, %v3613_v47  ;;  %v571_v34 = vmul.f32 %v3593_v44, %v3614_v61  ;;  %v3615_v18 = vld [vmem:[#allocation31_spill] sm:$0xff]  ;;  %v3617_v25 = vld [vmem:[#allocation34_spill] sm:$0xff]  ;;  %v3618_v56 = vld [vmem:[#allocation37_spill] sm:$0xff] }
  0x93   : > { %3591 = vst [vmem:[#allocation48_spill] sm:$0xff] %v2308_v33  ;;  %v572_v19 = vmul.f32 %v3593_v44, %v3615_v18  ;;  %v3616_v33 = vld [vmem:[#allocation33_spill] sm:$0xff]  ;;  %v574_v40 = vmul.f32 %v3593_v44, %v3617_v25  ;;  %v575_v59 = vmul.f32 %v3593_v44, %v3618_v56  ;;  %v3619_v23 = vld [vmem:[#allocation35_spill] sm:$0xff]  ;;  %v3620_v14 = vld [vmem:[#allocation38_spill] sm:$0xff]  ;;  %v579_v18 = vmul.f32 %v3593_v44, %v3576_v24 }
  0x94   : > { %v573_v48 = vmul.f32 %v3593_v44, %v3616_v33  ;;  %v576_v54 = vmul.f32 %v3593_v44, %v3619_v23  ;;  %v577_v47 = vmul.f32 %v3593_v44, %v3620_v14  ;;  %v3621_v12 = vld [vmem:[#allocation39_spill] sm:$0xff]  ;;  %v3622_v37 = vld [vmem:[#allocation42_spill] sm:$0xff]  ;;  %v2375_v56 = vadd.f32 %v550_v41, %v2215_v5 }
  0x95   : > { %v578_v61 = vmul.f32 %v3593_v44, %v3621_v12  ;;  %v580_v33 = vmul.f32 %v3593_v44, %v3622_v37  ;;  %v3623_v16 = vld [vmem:[#allocation43_spill] sm:$0xff]  ;;  %v2378_v23 = vadd.f32 %v551_v2, %v2218_v43  ;;  %v2381_v14 = vadd.f32 %v552_v58, %v2221_v45  ;;  %v3629_v58 = vld [vmem:[#allocation45_spill] sm:$0xff] }
  0x96   : > { %v581_v25 = vmul.f32 %v3593_v44, %v3623_v16  ;;  %v2384_v12 = vadd.f32 %v553_v13, %v2224_v4  ;;  %v2387_v24 = vadd.f32 %v554_v60, %v2227_v35  ;;  %v2390_v37 = vadd.f32 %v555_v52, %v2230_v9  ;;  %v3627_v2 = vld [vmem:[#allocation59_spill] sm:$0xff]  ;;  %v3631_v13 = vld [vmem:[#allocation60_spill] sm:$0xff]  ;;  %v3633_v60 = vld [vmem:[#allocation46_spill] sm:$0xff] }
  0x97   : > { %v2393_v44 = vadd.f32 %v556_v53, %v2233_v62  ;;  %v2396_v5 = vadd.f32 %v557_v50, %v2236_v20  ;;  %v2399_v43 = vadd.f32 %v558_v57, %v2239_v26  ;;  %v2402_v45 = vadd.f32 %v559_v7, %v2242_v63  ;;  %v3635_v52 = vld [vmem:[#allocation61_spill] sm:$0xff]  ;;  %v3644_v57 = vld [vmem:[#allocation8_spill] sm:$0xff] }
  0x98   : > { %v2405_v4 = vadd.f32 %v560_v6, %v2245_v39  ;;  %v2408_v35 = vadd.f32 %v561_v1, %v2248_v38  ;;  %v2411_v9 = vadd.f32 %v562_v36, %v2251_v31  ;;  %v2414_v62 = vadd.f32 %v563_v21, %v2254_v0  ;;  %v3648_v1 = vld [vmem:[#allocation13_spill] sm:$0xff]  ;;  %v3657_v7 = vld [vmem:[#allocation24_spill] sm:$0xff] }
  0x99   : > { %v2417_v20 = vadd.f32 %v564_v30, %v2257_v27  ;;  %v2420_v26 = vadd.f32 %v565_v28, %v2260_v46  ;;  %v2423_v63 = vadd.f32 %v566_v29, %v2263_v3  ;;  %v2426_v39 = vadd.f32 %v567_v42, %v2266_v49  ;;  %v3625_v3 = vld [vmem:[#allocation6_spill] sm:$0xff]  ;;  %v3645_v29 = vld [vmem:[#allocation11_spill] sm:$0xff]  ;;  %v3658_v28 = vld [vmem:[#allocation25_spill] sm:$0xff] }
  0x9a   : > { %v2429_v38 = vadd.f32 %v568_v55, %v2269_v32  ;;  %v2432_v31 = vadd.f32 %v569_v15, %v2272_v51  ;;  %v2435_v0 = vadd.f32 %v570_v22, %v2275_v17  ;;  %v2438_v27 = vadd.f32 %v571_v34, %v2278_v11  ;;  %v3646_v42 = vld [vmem:[#allocation10_spill] sm:$0xff]  ;;  %v3650_v22 = vld [vmem:[#allocation15_spill] sm:$0xff]  ;;  %v3651_v34 = vld [vmem:[#allocation17_spill] sm:$0xff] }
  0x9b   : > { %v2441_v46 = vadd.f32 %v572_v19, %v2281_v10  ;;  %v614_v41 = vperm.slane %v3625_v3, 7  ;;  %v2445_v49 = vadd.f32 %v573_v48, %v2284_v8  ;;  %v2448_v32 = vadd.f32 %v574_v40, %v3627_v2  ;;  %v3637_v19 = vld [vmem:[#allocation47_spill] sm:$0xff]  ;;  %v3639_v8 = vld [vmem:[#allocation62_spill] sm:$0xff]  ;;  %v3641_v40 = vld [vmem:[#allocation48_spill] sm:$0xff] }
  0x9c   : > { %v2451_v51 = vadd.f32 %v575_v59, %v3629_v58  ;;  %v2454_v17 = vadd.f32 %v576_v54, %v3631_v13  ;;  %v2457_v11 = vadd.f32 %v577_v47, %v3633_v60  ;;  %v2460_v10 = vadd.f32 %v578_v61, %v3635_v52  ;;  %v3652_v3 = vld [vmem:[#allocation18_spill] sm:$0xff]  ;;  %v3653_v58 = vld [vmem:[#allocation20_spill] sm:$0xff]  ;;  %v3654_v60 = vld [vmem:[#allocation21_spill] sm:$0xff] }
  0x9d   : > { %3624 = vst [vmem:[#allocation63_spill] sm:$0xff] %v2441_v46  ;;  %v2463_v53 = vadd.f32 %v579_v18, %v3637_v19  ;;  %v2466_v48 = vadd.f32 %v580_v33, %v3639_v8  ;;  %v2469_v50 = vadd.f32 %v581_v25, %v3641_v40  ;;  %v615_v47 = vmul.f32 %v614_v41, %v3644_v57  ;;  %v3647_v18 = vld [vmem:[#allocation14_spill] sm:$0xff]  ;;  %v3649_v25 = vld [vmem:[#allocation16_spill] sm:$0xff]  ;;  %v3655_v19 = vld [vmem:[#allocation23_spill] sm:$0xff] }
  0x9e   : > { %3626 = vst [vmem:[#allocation49_spill] sm:$0xff] %v2445_v49  ;;  %v616_v61 = vmul.f32 %v614_v41, %v3646_v42  ;;  %v617_v6 = vmul.f32 %v614_v41, %v3645_v29  ;;  %v618_v33 = vmul.f32 %v614_v41, %v3648_v1  ;;  %v619_v15 = vmul.f32 %v614_v41, %v3647_v18  ;;  %v3656_v40 = vld [vmem:[#allocation22_spill] sm:$0xff]  ;;  %v3660_v59 = vld [vmem:[#allocation27_spill] sm:$0xff]  ;;  %v3661_v1 = vld [vmem:[#allocation29_spill] sm:$0xff] }
  0x9f   : > { %3628 = vst [vmem:[#allocation64_spill] sm:$0xff] %v2448_v32  ;;  %v620_v36 = vmul.f32 %v614_v41, %v3649_v25  ;;  %v621_v21 = vmul.f32 %v614_v41, %v3650_v22  ;;  %v622_v30 = vmul.f32 %v614_v41, %v3651_v34  ;;  %v623_v2 = vmul.f32 %v614_v41, %v3652_v3  ;;  %v3659_v29 = vld [vmem:[#allocation26_spill] sm:$0xff]  ;;  %v3662_v42 = vld [vmem:[#allocation28_spill] sm:$0xff]  ;;  %v3671_v32 = vld [vmem:[#allocation41_spill] sm:$0xff] }
  0xa0   : > { %3630 = vst [vmem:[#allocation50_spill] sm:$0xff] %v2451_v51  ;;  %v624_v13 = vmul.f32 %v614_v41, %v3653_v58  ;;  %v625_v52 = vmul.f32 %v614_v41, %v3654_v60  ;;  %v626_v8 = vmul.f32 %v614_v41, %v3655_v19  ;;  %v627_v55 = vmul.f32 %v614_v41, %v3656_v40  ;;  %v3663_v22 = vld [vmem:[#allocation30_spill] sm:$0xff]  ;;  %v3670_v51 = vld [vmem:[#allocation39_spill] sm:$0xff] }
  0xa1   : > { %3632 = vst [vmem:[#allocation65_spill] sm:$0xff] %v2454_v17  ;;  %v628_v54 = vmul.f32 %v614_v41, %v3657_v7  ;;  %v629_v18 = vmul.f32 %v614_v41, %v3658_v28  ;;  %v630_v57 = vmul.f32 %v614_v41, %v3659_v29  ;;  %v631_v25 = vmul.f32 %v614_v41, %v3660_v59  ;;  %v3669_v17 = vld [vmem:[#allocation38_spill] sm:$0xff] }
  0xa2   : > { %3634 = vst [vmem:[#allocation51_spill] sm:$0xff] %v2457_v11  ;;  %v632_v34 = vmul.f32 %v614_v41, %v3661_v1  ;;  %v633_v3 = vmul.f32 %v614_v41, %v3662_v42  ;;  %v634_v58 = vmul.f32 %v614_v41, %v3663_v22  ;;  %v3668_v11 = vld [vmem:[#allocation35_spill] sm:$0xff]  ;;  %v640_v29 = vmul.f32 %v614_v41, %v3669_v17  ;;  %v3672_v49 = vld [vmem:[#allocation42_spill] sm:$0xff] }
  0xa3   : > { %3636 = vst [vmem:[#allocation66_spill] sm:$0xff] %v2460_v10  ;;  %v3667_v10 = vld [vmem:[#allocation37_spill] sm:$0xff]  ;;  %v639_v28 = vmul.f32 %v614_v41, %v3668_v11  ;;  %v641_v59 = vmul.f32 %v614_v41, %v3670_v51  ;;  %v642_v1 = vmul.f32 %v614_v41, %v3671_v32  ;;  %v643_v42 = vmul.f32 %v614_v41, %v3672_v49 }
  0xa4   : > { %3638 = vst [vmem:[#allocation52_spill] sm:$0xff] %v2463_v53  ;;  %v3666_v53 = vld [vmem:[#allocation34_spill] sm:$0xff]  ;;  %v638_v7 = vmul.f32 %v614_v41, %v3667_v10  ;;  %v644_v22 = vmul.f32 %v614_v41, %v3623_v16  ;;  %v645_v46 = vmul.f32 0.0, %v614_v41  ;;  %v2512_v10 = vadd.f32 %v617_v6, %v2381_v14 }
  0xa5   : > { %3640 = vst [vmem:[#allocation67_spill] sm:$0xff] %v2466_v48  ;;  %v3665_v48 = vld [vmem:[#allocation33_spill] sm:$0xff]  ;;  %v637_v40 = vmul.f32 %v614_v41, %v3666_v53  ;;  %v2515_v17 = vadd.f32 %v618_v33, %v2384_v12  ;;  %v2518_v51 = vadd.f32 %v619_v15, %v2387_v24  ;;  %v2521_v32 = vadd.f32 %v620_v36, %v2390_v37 }
  0xa6   : > { %3642 = vst [vmem:[#allocation53_spill] sm:$0xff] %v2469_v50  ;;  %v3664_v50 = vld [vmem:[#allocation31_spill] sm:$0xff]  ;;  %v636_v19 = vmul.f32 %v614_v41, %v3665_v48  ;;  %v2509_v48 = vadd.f32 %v616_v61, %v2378_v23  ;;  %v2530_v23 = vadd.f32 %v623_v2, %v2399_v43  ;;  %v2533_v14 = vadd.f32 %v624_v13, %v2402_v45 }
  0xa7   : > { %v635_v60 = vmul.f32 %v614_v41, %v3664_v50  ;;  %v2506_v50 = vadd.f32 %v615_v47, %v2375_v56  ;;  %v2524_v41 = vadd.f32 %v621_v21, %v2393_v44  ;;  %v2527_v56 = vadd.f32 %v622_v30, %v2396_v5  ;;  %v3709_v30 = vld [vmem:[#allocation21_spill] sm:$0xff]  ;;  %v3712_v13 = vld [vmem:[#allocation27_spill] sm:$0xff] }
  0xa8   : > { %3673 = vst [vmem:[#allocation68_spill] sm:$0xff] %v2530_v23  ;;  %v2536_v12 = vadd.f32 %v625_v52, %v2405_v4  ;;  %v2539_v24 = vadd.f32 %v626_v8, %v2408_v35  ;;  %v2542_v37 = vadd.f32 %v627_v55, %v2411_v9  ;;  %v2545_v44 = vadd.f32 %v628_v54, %v2414_v62 }
  0xa9   : > { %3674 = vst [vmem:[#allocation54_spill] sm:$0xff] %v2533_v14  ;;  %v2548_v5 = vadd.f32 %v629_v18, %v2417_v20  ;;  %v2551_v43 = vadd.f32 %v630_v57, %v2420_v26  ;;  %v2554_v45 = vadd.f32 %v631_v25, %v2423_v63  ;;  %v2557_v4 = vadd.f32 %v632_v34, %v2426_v39  ;;  %v3687_v26 = vld [vmem:[#allocation63_spill] sm:$0xff]  ;;  %v3689_v63 = vld [vmem:[#allocation49_spill] sm:$0xff]  ;;  %v3691_v39 = vld [vmem:[#allocation64_spill] sm:$0xff] }
  0xaa   : > { %3675 = vst [vmem:[#allocation69_spill] sm:$0xff] %v2536_v12  ;;  %v2560_v35 = vadd.f32 %v633_v3, %v2429_v38  ;;  %v2563_v9 = vadd.f32 %v634_v58, %v2432_v31  ;;  %v2566_v62 = vadd.f32 %v635_v60, %v2435_v0  ;;  %v2569_v20 = vadd.f32 %v636_v19, %v2438_v27  ;;  %v3693_v38 = vld [vmem:[#allocation50_spill] sm:$0xff]  ;;  %v3695_v31 = vld [vmem:[#allocation65_spill] sm:$0xff]  ;;  %v3697_v0 = vld [vmem:[#allocation51_spill] sm:$0xff] }
  0xab   : > { %3676 = vst [vmem:[#allocation12_spill] sm:$0xff] %v2539_v24  ;;  %v2572_v57 = vadd.f32 %v637_v40, %v3687_v26  ;;  %v2575_v54 = vadd.f32 %v638_v7, %v3689_v63  ;;  %v2578_v47 = vadd.f32 %v639_v28, %v3691_v39  ;;  %v2581_v61 = vadd.f32 %v640_v29, %v3693_v38  ;;  %v3699_v27 = vld [vmem:[#allocation66_spill] sm:$0xff]  ;;  %v3701_v33 = vld [vmem:[#allocation52_spill] sm:$0xff]  ;;  %v3707_v29 = vld [vmem:[#allocation15_spill] sm:$0xff] }
  0xac   : > { %3677 = vst [vmem:[#allocation79_spill] sm:$0xff] %v2542_v37  ;;  %v2584_v6 = vadd.f32 %v641_v59, %v3695_v31  ;;  %v2587_v18 = vadd.f32 %v642_v1, %v3697_v0  ;;  %v2590_v55 = vadd.f32 %v643_v42, %v3699_v27  ;;  %v2593_v15 = vadd.f32 %v644_v22, %v3701_v33  ;;  %v3703_v7 = vld [vmem:[#allocation67_spill] sm:$0xff]  ;;  %v3708_v34 = vld [vmem:[#allocation18_spill] sm:$0xff]  ;;  %v3711_v58 = vld [vmem:[#allocation25_spill] sm:$0xff] }
  0xad   : > { %3678 = vst [vmem:[#allocation70_spill] sm:$0xff] %v2545_v44  ;;  %v2596_v25 = vadd.f32 %v645_v46, %v3703_v7  ;;  %v3705_v28 = vld [vmem:[#allocation53_spill] sm:$0xff]  ;;  %v682_v21 = vrot.slane %v3707_v29, 1  ;;  %v683_v59 = vrot.slane %v3708_v34, 1  ;;  %v684_v3 = vrot.slane %v3709_v30, 1  ;;  %v3710_v1 = vld [vmem:[#allocation22_spill] sm:$0xff] }
  0xae   : > { %3679 = vst [vmem:[#allocation71_spill] sm:$0xff] %v2548_v5  ;;  %v2599_v36 = vadd.f32 %v645_v46, %v3705_v28  ;;  %v685_v2 = vrot.slane %v3710_v1, 1  ;;  %v686_v42 = vrot.slane %v3711_v58, 1  ;;  %v687_v60 = vrot.slane %v3712_v13, 1  ;;  %v3713_v22 = vld [vmem:[#allocation28_spill] sm:$0xff]  ;;  %v3714_v19 = vld [vmem:[#allocation31_spill] sm:$0xff] }
  0xaf   : > { %3680 = vst [vmem:[#allocation72_spill] sm:$0xff] %v2551_v43  ;;  %v688_v52 = vrot.slane %v3713_v22, 1  ;;  %v689_v8 = vrot.slane %v3714_v19, 1  ;;  %v690_v40 = vrot.slane %v3666_v53, 1  ;;  %v691_v46 = vrot.slane %v3668_v11, 1  ;;  %v3715_v26 = vld [vmem:[#allocation39_spill] sm:$0xff] }
  0xb0   : > { %3681 = vst [vmem:[#allocation73_spill] sm:$0xff] %v2554_v45  ;;  %v692_v63 = vrot.slane %v3715_v26, 1  ;;  %v693_v39 = vrot.slane %v3672_v49, 1  ;;  %v3716_v38 = vld [vmem:[#allocation9_spill] sm:$0xff]  ;;  %v3717_v0 = vld [vmem:[#allocation10_spill] sm:$0xff]  ;;  %v3719_v28 = vld [vmem:[#allocation16_spill] sm:$0xff] }
  0xb1   : > { %3682 = vst [vmem:[#allocation74_spill] sm:$0xff] %v2557_v4  ;;  %v694_v31 = vrot.slane %v3716_v38, 1  ;;  %v695_v27 = vrot.slane %v3717_v0, 1  ;;  %v3718_v33 = vld [vmem:[#allocation13_spill] sm:$0xff]  ;;  %v697_v29 = vrot.slane %v3719_v28, 1  ;;  %v3721_v1 = vld [vmem:[#allocation20_spill] sm:$0xff] }
  0xb2   : > { %3683 = vst [vmem:[#allocation75_spill] sm:$0xff] %v2560_v35  ;;  %v696_v7 = vrot.slane %v3718_v33, 1  ;;  %v3720_v34 = vld [vmem:[#allocation17_spill] sm:$0xff]  ;;  %v699_v58 = vrot.slane %v3721_v1, 1  ;;  %v3722_v13 = vld [vmem:[#allocation23_spill] sm:$0xff]  ;;  %v3723_v22 = vld [vmem:[#allocation24_spill] sm:$0xff] }
  0xb3   : > { %3684 = vst [vmem:[#allocation76_spill] sm:$0xff] %v2563_v9  ;;  %v698_v30 = vrot.slane %v3720_v34, 1  ;;  %v700_v53 = vrot.slane %v3722_v13, 1  ;;  %v701_v11 = vrot.slane %v3723_v22, 1  ;;  %v3724_v19 = vld [vmem:[#allocation26_spill] sm:$0xff]  ;;  %v709_v1 = vrot.slane %v3623_v16, 1 }
  0xb4   : > { %3685 = vst [vmem:[#allocation77_spill] sm:$0xff] %v2566_v62  ;;  %v702_v26 = vrot.slane %v3724_v19, 1  ;;  %v3732_v13 = vld [vmem:[#allocation7_spill] sm:$0xff] }
  0xb5   : > { %3686 = vst [vmem:[#allocation78_spill] sm:$0xff] %v2569_v20  ;;  %v3733_v22 = vrot.slane %v3732_v13, 1  ;;  %v3750_v5 = vrot.slane %v3732_v13, 1 }
  0xb6   : > { %3688 = vst [vmem:[#allocation80_spill] sm:$0xff] %v2572_v57 }
  0xb7   : > { %3690 = vst [vmem:[#allocation81_spill] sm:$0xff] %v2575_v54 }
  0xb8   : > { %3692 = vst [vmem:[#allocation32_spill] sm:$0xff] %v2578_v47  ;;  %v3738_v47 = vld [vmem:[#allocation14_spill] sm:$0xff] }
  0xb9   : > { %3694 = vst [vmem:[#allocation56_spill] sm:$0xff] %v2581_v61  ;;  %v3731_v61 = vld [vmem:[#allocation5_spill] sm:$0xff]  ;;  %v3739_v16 = vrot.slane %v3738_v47, 1  ;;  %v3753_v23 = vrot.slane %v3738_v47, 1 }
  0xba   : > { %3696 = vst [vmem:[#allocation36_spill] sm:$0xff] %v2584_v6  ;;  %v3730_v6 = vld [vmem:[#allocation41_spill] sm:$0xff]  ;;  %vm710_vm3 = vcmp.lt.s32.totalorder %v3731_v61, 7 }
  0xbb   : > { %3698 = vst [vmem:[#allocation57_spill] sm:$0xff] %v2587_v18  ;;  %v3729_v18 = vld [vmem:[#allocation38_spill] sm:$0xff]  ;;  %v708_v34 = vrot.slane %v3730_v6, 1  ;;  %v2634_v19 = vsel %vm710_vm3, %v3733_v22, %v694_v31  ;;  %v2652_v54 = vsel %vm710_vm3, %v3739_v16, %v697_v29  ;;  %v2656_v22 = vsel %vm710_vm3, %v682_v21, %v698_v30 }
  0xbc   : > { %3700 = vst [vmem:[#allocation40_spill] sm:$0xff] %v2590_v55  ;;  %v3728_v55 = vld [vmem:[#allocation37_spill] sm:$0xff]  ;;  %v707_v28 = vrot.slane %v3729_v18, 1  ;;  %v2664_v57 = vsel %vm710_vm3, %v684_v3, %v700_v53  ;;  %v2672_v16 = vsel %vm710_vm3, %v686_v42, %v702_v26  ;;  %v2700_v43 = vsel %vm710_vm3, %v693_v39, %v709_v1 }
  0xbd   : > { %3702 = vst [vmem:[#allocation58_spill] sm:$0xff] %v2593_v15  ;;  %v3727_v15 = vld [vmem:[#allocation33_spill] sm:$0xff]  ;;  %v706_v33 = vrot.slane %v3728_v55, 1  ;;  %v3736_v55 = vld [vmem:[#allocation11_spill] sm:$0xff]  ;;  %v2696_v45 = vsel %vm710_vm3, %v692_v63, %v708_v34  ;;  %v727_v44 = vsel %vm710_vm3, %v694_v31, %v3750_v5  ;;  %v731_v13 = vsel %vm710_vm3, %v698_v30, %v682_v21 }
  0xbe   : > { %3704 = vst [vmem:[#allocation44_spill] sm:$0xff] %v2596_v25  ;;  %v3726_v25 = vld [vmem:[#allocation30_spill] sm:$0xff]  ;;  %v705_v0 = vrot.slane %v3727_v15, 1  ;;  %v3737_v18 = vrot.slane %v3736_v55, 1  ;;  %v2692_v4 = vsel %vm710_vm3, %v691_v46, %v707_v28  ;;  %v3752_v12 = vrot.slane %v3736_v55, 1 }
  0xbf   : > { %3706 = vst [vmem:[#allocation55_spill] sm:$0xff] %v2599_v36  ;;  %v3725_v36 = vld [vmem:[#allocation29_spill] sm:$0xff]  ;;  %v704_v38 = vrot.slane %v3726_v25, 1  ;;  %v2688_v35 = vsel %vm710_vm3, %v690_v40, %v706_v33  ;;  %v732_v5 = vsel %vm710_vm3, %v699_v58, %v683_v59  ;;  %v733_v31 = vsel %vm710_vm3, %v700_v53, %v684_v3 }
  0xc0   : > { %v703_v49 = vrot.slane %v3725_v36, 1  ;;  %v3734_v36 = vld [vmem:[#allocation8_spill] sm:$0xff]  ;;  %v2646_v6 = vsel %vm710_vm3, %v3737_v18, %v696_v7  ;;  %3740 = vst [vmem:[#allocation43_spill] sm:$0xff] %v2664_v57  ;;  %v2668_v18 = vsel %vm710_vm3, %v685_v2, %v701_v11  ;;  %v2684_v9 = vsel %vm710_vm3, %v689_v8, %v705_v0 }
  0xc1   : > { %v3735_v25 = vrot.slane %v3734_v36, 1  ;;  %3741 = vst [vmem:[#allocation6_spill] sm:$0xff] %v2668_v18  ;;  %v2680_v62 = vsel %vm710_vm3, %v688_v52, %v704_v38  ;;  %v3751_v37 = vrot.slane %v3734_v36, 1  ;;  %v729_v14 = vsel %vm710_vm3, %v696_v7, %v3752_v12 }
  0xc2   : > { %3742 = vst [vmem:[#allocation59_spill] sm:$0xff] %v2672_v16  ;;  %v2676_v20 = vsel %vm710_vm3, %v687_v60, %v703_v49  ;;  %v735_v12 = vsel %vm710_vm3, %v702_v26, %v686_v42  ;;  %v736_v47 = vsel %vm710_vm3, %v703_v49, %v687_v60  ;;  %v738_v21 = vsel %vm710_vm3, %v705_v0, %v689_v8 }
  0xc3   : > { %v2640_v15 = vsel %vm710_vm3, %v3735_v25, %v695_v27  ;;  %v2660_v25 = vsel %vm710_vm3, %v683_v59, %v699_v58  ;;  %3743 = vst [vmem:[#allocation45_spill] sm:$0xff] %v2676_v20  ;;  %v728_v24 = vsel %vm710_vm3, %v695_v27, %v3751_v37  ;;  %v734_v37 = vsel %vm710_vm3, %v701_v11, %v685_v2  ;;  %v3754_v27 = vld [vmem:[#allocation19_spill] sm:$0xff] }
  0xc4   : > { %3744 = vst [vmem:[#allocation60_spill] sm:$0xff] %v2680_v62  ;;  %v739_v59 = vsel %vm710_vm3, %v706_v33, %v690_v40  ;;  %v740_v3 = vsel %vm710_vm3, %v707_v28, %v691_v46  ;;  %v741_v2 = vsel %vm710_vm3, %v708_v34, %v692_v63  ;;  %v742_v42 = vsel %vm710_vm3, %v709_v1, %v693_v39  ;;  %v1277_v39 = vld [vmem:[%s3240_s1] sm:$0xff] }
  0xc5   : > { %3745 = vst [vmem:[#allocation46_spill] sm:$0xff] %v2684_v9  ;;  %v2743_v60 = vmul.f32 0.0, %v3754_v27  ;;  %v2749_v8 = vmul.f32 %v3754_v27, %v728_v24  ;;  %v2752_v40 = vmul.f32 %v3754_v27, %v729_v14  ;;  %v2758_v63 = vmul.f32 %v3754_v27, %v731_v13 }
  0xc6   : > { %3746 = vst [vmem:[#allocation61_spill] sm:$0xff] %v2688_v35  ;;  %v2761_v61 = vmul.f32 %v3754_v27, %v732_v5  ;;  %v2769_v24 = vmul.f32 %v3754_v27, %v733_v31  ;;  %v2772_v14 = vmul.f32 %v3754_v27, %v734_v37  ;;  %v777_v7 = vperm.slane %v1277_v39, 2 }
  0xc7   : > { %3747 = vst [vmem:[#allocation47_spill] sm:$0xff] %v2692_v4  ;;  %v2787_v58 = vmul.f32 %v3754_v27, %v738_v21  ;;  %v2790_v53 = vmul.f32 %v3754_v27, %v739_v59  ;;  %v2793_v11 = vmul.f32 %v3754_v27, %v740_v3  ;;  %v2796_v26 = vmul.f32 %v3754_v27, %v741_v2 }
  0xc8   : > { %3748 = vst [vmem:[#allocation62_spill] sm:$0xff] %v2696_v45  ;;  %v2799_v49 = vmul.f32 %v3754_v27, %v742_v42  ;;  %v778_v1 = vmul.f32 0.0, %v777_v7  ;;  %v779_v36 = vmul.f32 %v777_v7, %v2743_v60  ;;  %v780_v55 = vmul.f32 %v777_v7, %v2634_v19 }
  0xc9   : > { %3749 = vst [vmem:[#allocation48_spill] sm:$0xff] %v2700_v43  ;;  %v730_v43 = vsel %vm710_vm3, %v697_v29, %v3753_v23  ;;  %v737_v23 = vsel %vm710_vm3, %v704_v38, %v688_v52  ;;  %v2746_v52 = vmul.f32 %v3754_v27, %v727_v44  ;;  %v2766_v44 = vld [vmem:[%s3240_s1 + $0x8] ss:$0 sm:$0xff]  ;;  %v2781_v29 = vmul.f32 %v3754_v27, %v736_v47 }
  0xca   : > { %3755 = vst [vmem:[#allocation34_spill] sm:$0xff] %v2743_v60  ;;  %v2755_v46 = vmul.f32 %v3754_v27, %v730_v43  ;;  %v2775_v43 = vmul.f32 %v3754_v27, %v735_v12  ;;  %v2784_v30 = vmul.f32 %v3754_v27, %v737_v23  ;;  %v2801_v38 = vperm.slane %v1277_v39, 5 }
  0xcb   : > { %3756 = vst [vmem:[#allocation35_spill] sm:$0xff] %v2766_v44  ;;  %v2805_v0 = vmul.f32 %v2766_v44, %v2640_v15  ;;  %v2809_v33 = vmul.f32 %v2766_v44, %v2749_v8  ;;  %v2813_v28 = vmul.f32 %v2766_v44, %v2646_v6  ;;  %v2817_v34 = vmul.f32 %v2766_v44, %v2752_v40 }
  0xcc   : > { %3757 = vst [vmem:[#allocation42_spill] sm:$0xff] %v2769_v24  ;;  %v2823_v13 = vmul.f32 %v2766_v44, %v2652_v54  ;;  %v781_v5 = vmul.f32 %v777_v7, %v2746_v52  ;;  %v782_v31 = vmul.f32 %v777_v7, %v2640_v15  ;;  %v783_v37 = vmul.f32 %v777_v7, %v2749_v8 }
  0xcd   : > { %3758 = vst [vmem:[#allocation63_spill] sm:$0xff] %v2772_v14  ;;  %v784_v12 = vmul.f32 %v777_v7, %v2646_v6  ;;  %v785_v47 = vmul.f32 %v777_v7, %v2752_v40  ;;  %v786_v23 = vmul.f32 %v777_v7, %v2652_v54  ;;  %v787_v21 = vmul.f32 %v777_v7, %v2755_v46 }
  0xce   : > { %3759 = vst [vmem:[#allocation49_spill] sm:$0xff] %v2775_v43  ;;  %v788_v59 = vmul.f32 %v777_v7, %v2656_v22  ;;  %v789_v3 = vmul.f32 %v777_v7, %v2758_v63  ;;  %v790_v2 = vmul.f32 %v777_v7, %v2660_v25  ;;  %v791_v42 = vmul.f32 %v777_v7, %v2761_v61 }
  0xcf   : > { %3760 = vst [vmem:[#allocation64_spill] sm:$0xff] %v2781_v29  ;;  %v792_v27 = vmul.f32 %v777_v7, %v2664_v57  ;;  %v793_v39 = vmul.f32 %v777_v7, %v2769_v24  ;;  %v794_v60 = vmul.f32 %v777_v7, %v2668_v18  ;;  %v798_v44 = vmul.f32 %v777_v7, %v2676_v20 }
  0xd0   : > { %3761 = vst [vmem:[#allocation50_spill] sm:$0xff] %v2784_v30  ;;  %v802_v57 = vmul.f32 %v777_v7, %v2684_v9  ;;  %v803_v24 = vmul.f32 %v777_v7, %v2787_v58  ;;  %v804_v18 = vmul.f32 %v777_v7, %v2688_v35  ;;  %v808_v20 = vmul.f32 %v777_v7, %v2696_v45  ;;  %v3772_v45 = vld [vmem:[#allocation68_spill] sm:$0xff] }
  0xd1   : > { %3762 = vst [vmem:[#allocation65_spill] sm:$0xff] %v2787_v58  ;;  %v812_v9 = vadd.f32 %v780_v55, %v2512_v10  ;;  %v813_v58 = vadd.f32 %v781_v5, %v2515_v17  ;;  %v814_v35 = vadd.f32 %v782_v31, %v2518_v51  ;;  %v3775_v17 = vld [vmem:[#allocation12_spill] sm:$0xff]  ;;  %v3776_v51 = vld [vmem:[#allocation79_spill] sm:$0xff] }
  0xd2   : > { %3763 = vst [vmem:[#allocation51_spill] sm:$0xff] %v2790_v53 }
  0xd3   : > { %3764 = vst [vmem:[#allocation66_spill] sm:$0xff] %v2793_v11 }
  0xd4   : > { %3765 = vst [vmem:[#allocation52_spill] sm:$0xff] %v2796_v26 }
  0xd5   : > { %3766 = vst [vmem:[#allocation67_spill] sm:$0xff] %v2799_v49  ;;  %v795_v49 = vmul.f32 %v777_v7, %v2772_v14  ;;  %v805_v14 = vmul.f32 %v777_v7, %v2790_v53  ;;  %v815_v53 = vadd.f32 %v783_v37, %v2521_v32  ;;  %v2879_v32 = vadd.f32 %v790_v2, %v3776_v51  ;;  %v3780_v37 = vld [vmem:[#allocation73_spill] sm:$0xff] }
  0xd6   : > { %3767 = vst [vmem:[#allocation53_spill] sm:$0xff] %v2805_v0  ;;  %v801_v0 = vmul.f32 %v777_v7, %v2784_v30  ;;  %v811_v30 = vadd.f32 %v779_v36, %v2509_v48  ;;  %v3774_v48 = vld [vmem:[#allocation69_spill] sm:$0xff]  ;;  %v2876_v36 = vadd.f32 %v789_v3, %v3775_v17  ;;  %v3783_v3 = vld [vmem:[#allocation76_spill] sm:$0xff] }
  0xd7   : > { %3768 = vst [vmem:[#allocation15_spill] sm:$0xff] %v2809_v33  ;;  %v800_v33 = vmul.f32 %v777_v7, %v2680_v62  ;;  %v810_v62 = vadd.f32 %v778_v1, %v2506_v50  ;;  %v3773_v50 = vld [vmem:[#allocation54_spill] sm:$0xff]  ;;  %v2873_v10 = vadd.f32 %v788_v59, %v3774_v48 }
  0xd8   : > { %3769 = vst [vmem:[#allocation18_spill] sm:$0xff] %v2813_v28  ;;  %v799_v28 = vmul.f32 %v777_v7, %v2781_v29  ;;  %v809_v29 = vmul.f32 %v777_v7, %v2796_v26  ;;  %v2870_v1 = vadd.f32 %v787_v21, %v3773_v50  ;;  %v3782_v21 = vld [vmem:[#allocation75_spill] sm:$0xff] }
  0xd9   : > { %3770 = vst [vmem:[#allocation21_spill] sm:$0xff] %v2817_v34  ;;  %v797_v34 = vmul.f32 %v777_v7, %v2775_v43  ;;  %v807_v43 = vmul.f32 %v777_v7, %v2793_v11  ;;  %v2864_v11 = vadd.f32 %v785_v47, %v2527_v56  ;;  %v3778_v56 = vld [vmem:[#allocation71_spill] sm:$0xff]  ;;  %v3781_v47 = vld [vmem:[#allocation74_spill] sm:$0xff] }
  0xda   : > { %3771 = vst [vmem:[#allocation22_spill] sm:$0xff] %v2823_v13  ;;  %v796_v13 = vmul.f32 %v777_v7, %v2672_v16  ;;  %v806_v16 = vmul.f32 %v777_v7, %v2692_v4  ;;  %v2861_v4 = vadd.f32 %v784_v12, %v2524_v41  ;;  %v2867_v7 = vadd.f32 %v786_v23, %v3772_v45  ;;  %v3777_v41 = vld [vmem:[#allocation70_spill] sm:$0xff]  ;;  %v3779_v45 = vld [vmem:[#allocation72_spill] sm:$0xff] }
  0xdb   : > { %v2882_v55 = vadd.f32 %v791_v42, %v3777_v41  ;;  %v2885_v5 = vadd.f32 %v792_v27, %v3778_v56  ;;  %v2888_v31 = vadd.f32 %v793_v39, %v3779_v45  ;;  %v2891_v12 = vadd.f32 %v794_v60, %v3780_v37  ;;  %v3785_v42 = vld [vmem:[#allocation77_spill] sm:$0xff]  ;;  %v3787_v27 = vld [vmem:[#allocation78_spill] sm:$0xff]  ;;  %v3789_v39 = vld [vmem:[#allocation80_spill] sm:$0xff] }
  0xdc   : > { %v2894_v23 = vadd.f32 %v795_v49, %v3781_v47  ;;  %v2897_v59 = vadd.f32 %v796_v13, %v3782_v21  ;;  %v2900_v2 = vadd.f32 %v797_v34, %v3783_v3  ;;  %v2903_v50 = vadd.f32 %v798_v44, %v3785_v42  ;;  %v3791_v60 = vld [vmem:[#allocation81_spill] sm:$0xff]  ;;  %v3793_v44 = vld [vmem:[#allocation32_spill] sm:$0xff]  ;;  %v3803_v21 = vld [vmem:[#allocation58_spill] sm:$0xff] }
  0xdd   : > { %v2906_v48 = vadd.f32 %v799_v28, %v3787_v27  ;;  %v2909_v17 = vadd.f32 %v800_v33, %v3789_v39  ;;  %v2912_v51 = vadd.f32 %v801_v0, %v3791_v60  ;;  %v843_v49 = vmul.f32 %v2801_v38, %v2634_v19  ;;  %v3795_v28 = vld [vmem:[#allocation56_spill] sm:$0xff]  ;;  %v3799_v0 = vld [vmem:[#allocation57_spill] sm:$0xff]  ;;  %v3809_v60 = vld [vmem:[#allocation43_spill] sm:$0xff] }
  0xde   : > { %3784 = vst [vmem:[#allocation25_spill] sm:$0xff] %v2900_v2  ;;  %v844_v13 = vmul.f32 %v2801_v38, %v2746_v52  ;;  %v845_v34 = vmul.f32 %v2801_v38, %v2640_v15  ;;  %v2921_v41 = vadd.f32 %v802_v57, %v3793_v44  ;;  %v2924_v56 = vadd.f32 %v803_v24, %v3795_v28  ;;  %v3797_v33 = vld [vmem:[#allocation36_spill] sm:$0xff]  ;;  %v3807_v24 = vld [vmem:[#allocation55_spill] sm:$0xff]  ;;  %v3810_v44 = vld [vmem:[#allocation42_spill] sm:$0xff] }
  0xdf   : > { %3786 = vst [vmem:[#allocation27_spill] sm:$0xff] %v2903_v50  ;;  %v2927_v45 = vadd.f32 %v804_v18, %v3797_v33  ;;  %v2930_v37 = vadd.f32 %v805_v14, %v3799_v0  ;;  %v3801_v47 = vld [vmem:[#allocation40_spill] sm:$0xff]  ;;  %v2936_v52 = vadd.f32 %v807_v43, %v3803_v21  ;;  %v846_v57 = vmul.f32 %v2801_v38, %v2749_v8  ;;  %v3813_v28 = vld [vmem:[#allocation59_spill] sm:$0xff]  ;;  %v3814_v0 = vld [vmem:[#allocation49_spill] sm:$0xff] }
  0xe0   : > { %3788 = vst [vmem:[#allocation28_spill] sm:$0xff] %v2906_v48  ;;  %v2933_v19 = vadd.f32 %v806_v16, %v3801_v47  ;;  %v3805_v3 = vld [vmem:[#allocation44_spill] sm:$0xff]  ;;  %v2944_v42 = vadd.f32 %v809_v29, %v3807_v24  ;;  %v847_v18 = vmul.f32 %v2801_v38, %v2646_v6  ;;  %v848_v14 = vmul.f32 %v2801_v38, %v2752_v40  ;;  %v3815_v21 = vld [vmem:[#allocation45_spill] sm:$0xff] }
  0xe1   : > { %3790 = vst [vmem:[#allocation31_spill] sm:$0xff] %v2909_v17  ;;  %v2939_v15 = vadd.f32 %v808_v20, %v3805_v3  ;;  %v849_v16 = vmul.f32 %v2801_v38, %v2652_v54  ;;  %v850_v43 = vmul.f32 %v2801_v38, %v2755_v46  ;;  %v875_v20 = vadd.f32 %v843_v49, %v810_v62  ;;  %v3822_v17 = vld [vmem:[#allocation21_spill] sm:$0xff] }
  0xe2   : > { %3792 = vst [vmem:[#allocation39_spill] sm:$0xff] %v2912_v51  ;;  %v876_v27 = vadd.f32 %v844_v13, %v811_v30  ;;  %v877_v39 = vadd.f32 %v845_v34, %v812_v9  ;;  %v851_v8 = vmul.f32 %v2801_v38, %v2656_v22  ;;  %v852_v29 = vmul.f32 %v2801_v38, %v2758_v63  ;;  %v3811_v9 = vld [vmem:[#allocation6_spill] sm:$0xff]  ;;  %v3812_v13 = vld [vmem:[#allocation63_spill] sm:$0xff]  ;;  %v3830_v2 = vld [vmem:[#allocation65_spill] sm:$0xff] }
  0xe3   : > { %3794 = vst [vmem:[#allocation9_spill] sm:$0xff] %v2921_v41  ;;  %v853_v6 = vmul.f32 %v2801_v38, %v2660_v25  ;;  %v854_v40 = vmul.f32 %v2801_v38, %v2761_v61  ;;  %v855_v54 = vmul.f32 %v2801_v38, %v3809_v60  ;;  %v2966_v62 = vmul.f32 %v2801_v38, %v3810_v44  ;;  %v3821_v41 = vld [vmem:[#allocation35_spill] sm:$0xff] }
  0xe4   : > { %3796 = vst [vmem:[#allocation10_spill] sm:$0xff] %v2924_v56  ;;  %v2970_v30 = vmul.f32 %v2801_v38, %v3811_v9  ;;  %v878_v49 = vadd.f32 %v846_v57, %v813_v58  ;;  %v2974_v34 = vmul.f32 %v2801_v38, %v3812_v13  ;;  %v2978_v33 = vmul.f32 %v2801_v38, %v3813_v28  ;;  %v3817_v58 = vld [vmem:[#allocation15_spill] sm:$0xff] }
  0xe5   : > { %3798 = vst [vmem:[#allocation13_spill] sm:$0xff] %v2927_v45  ;;  %v2982_v47 = vmul.f32 %v2801_v38, %v3814_v0  ;;  %v2986_v3 = vmul.f32 %v2801_v38, %v3815_v21  ;;  %v879_v24 = vadd.f32 %v847_v18, %v814_v35  ;;  %v941_v57 = vadd.f32 %v3817_v58, %v876_v27  ;;  %v3823_v18 = vld [vmem:[#allocation60_spill] sm:$0xff] }
  0xe6   : > { %3800 = vst [vmem:[#allocation16_spill] sm:$0xff] %v2930_v37  ;;  %v3819_v37 = vld [vmem:[#allocation64_spill] sm:$0xff]  ;;  %v880_v56 = vadd.f32 %v848_v14, %v815_v53  ;;  %v913_v51 = vmul.f32 %v3821_v41, %v2755_v46  ;;  %v943_v48 = vadd.f32 %v3822_v17, %v878_v49  ;;  %v3827_v53 = vld [vmem:[#allocation46_spill] sm:$0xff]  ;;  %v881_v17 = vadd.f32 %v849_v16, %v2861_v4 }
  0xe7   : > { %3802 = vst [vmem:[#allocation17_spill] sm:$0xff] %v2933_v19  ;;  %v2993_v45 = vmul.f32 %v2801_v38, %v3819_v37  ;;  %v974_v35 = vsel %vm972_vm4, %v941_v57, 0.0  ;;  %v3011_v46 = vmul.f32 %v2801_v38, %v3827_v53  ;;  %v3829_v49 = vld [vmem:[#allocation22_spill] sm:$0xff]  ;;  %v3834_v53 = vld [vmem:[#allocation51_spill] sm:$0xff]  ;;  %v882_v16 = vadd.f32 %v850_v43, %v2864_v11 }
  0xe8   : > { %3804 = vst [vmem:[#allocation20_spill] sm:$0xff] %v2936_v52  ;;  %v3818_v52 = vld [vmem:[#allocation18_spill] sm:$0xff]  ;;  %v944_v58 = vadd.f32 %v3829_v49, %v879_v24  ;;  %v945_v24 = vadd.f32 %v913_v51, %v880_v56  ;;  %v3836_v49 = vld [vmem:[#allocation47_spill] sm:$0xff]  ;;  %v883_v11 = vadd.f32 %v851_v8, %v2867_v7  ;;  %v3052_v43 = vmul.f32 %v2801_v38, %v2796_v26 }
  0xe9   : > { %3806 = vst [vmem:[#allocation23_spill] sm:$0xff] %v2939_v15  ;;  %v942_v19 = vadd.f32 %v3818_v52, %v877_v39  ;;  %v3003_v52 = vmul.f32 %v2801_v38, %v3823_v18  ;;  %v914_v39 = vmul.f32 %v3821_v41, %v2656_v22  ;;  %v915_v22 = vmul.f32 %v3821_v41, %v2758_v63 }
  0xea   : > { %3808 = vst [vmem:[#allocation24_spill] sm:$0xff] %v2944_v42  ;;  %v3816_v42 = vld [vmem:[#allocation53_spill] sm:$0xff]  ;;  %v916_v63 = vmul.f32 %v3821_v41, %v2660_v25  ;;  %v982_v56 = vsel %vm972_vm4, %v945_v24, 0.0  ;;  %v917_v7 = vmul.f32 %v3821_v41, %v2761_v61  ;;  %v886_v61 = vadd.f32 %v854_v40, %v2876_v36 }
  0xeb   : > { %v940_v15 = vadd.f32 %v3816_v42, %v875_v20  ;;  %3820 = vst [vmem:[#allocation26_spill] sm:$0xff] %v2993_v45  ;;  %v976_v42 = vsel %vm972_vm4, %v942_v19, 0.0  ;;  %v3825_v20 = vld [vmem:[#allocation50_spill] sm:$0xff]  ;;  %v978_v45 = vsel %vm972_vm4, %v943_v48, 0.0  ;;  %v946_v51 = vadd.f32 %v914_v39, %v881_v17  ;;  %v3843_v17 = vld [vmem:[#allocation67_spill] sm:$0xff] }
  0xec   : > { %3824 = vst [vmem:[#allocation29_spill] sm:$0xff] %v3003_v52  ;;  %v3007_v27 = vmul.f32 %v2801_v38, %v3825_v20  ;;  %v3020_v52 = vmul.f32 %v2801_v38, %v3830_v2  ;;  %v3832_v20 = vld [vmem:[#allocation61_spill] sm:$0xff]  ;;  %v3064_v39 = vmul.f32 %v2801_v38, %v3843_v17  ;;  %v1044_v26 = vmul.f32 %v942_v19, %v942_v19 }
  0xed   : > { %v973_v50 = vsel %vm972_vm4, %v940_v15, 0.0  ;;  %3828 = vst [vmem:[#allocation33_spill] sm:$0xff] %v3011_v46  ;;  %v3837_v46 = vld [vmem:[#allocation66_spill] sm:$0xff]  ;;  %v984_v25 = vsel %vm972_vm4, %v946_v51, 0.0  ;;  %v1042_v8 = vmul.f32 %v940_v15, %v940_v15  ;;  %v920_v36 = vmul.f32 %v3821_v41, %v3811_v9 }
  0xee   : > { %3826 = vst [vmem:[#allocation30_spill] sm:$0xff] %v3007_v27  ;;  %v975_v14 = vadd.f32 %v974_v35, %v973_v50  ;;  %v3024_v27 = vmul.f32 %v2801_v38, %v3832_v20  ;;  %v3028_v50 = vmul.f32 %v2801_v38, %v3834_v53  ;;  %v980_v35 = vsel %vm972_vm4, %v944_v58, 0.0  ;;  %v3839_v20 = vld [vmem:[#allocation62_spill] sm:$0xff] }
  0xef   : > { %3831 = vst [vmem:[#allocation37_spill] sm:$0xff] %v3020_v52  ;;  %v3036_v52 = vmul.f32 %v2801_v38, %v3836_v49  ;;  %v889_v9 = vadd.f32 %v2970_v30, %v2885_v5  ;;  %v923_v5 = vmul.f32 %v3821_v41, %v3814_v0  ;;  %v892_v0 = vadd.f32 %v2982_v47, %v2894_v23 }
  0xf0   : > { %3833 = vst [vmem:[#allocation38_spill] sm:$0xff] %v3024_v27  ;;  %v977_v4 = vadd.f32 %v976_v42, %v975_v14  ;;  %v3040_v27 = vmul.f32 %v2801_v38, %v3837_v46  ;;  %v3842_v14 = vld [vmem:[#allocation48_spill] sm:$0xff]  ;;  %v926_v23 = vmul.f32 %v3821_v41, %v3823_v18 }
  0xf1   : > { %3835 = vst [vmem:[#allocation41_spill] sm:$0xff] %v3028_v50  ;;  %v3044_v50 = vmul.f32 %v2801_v38, %v3839_v20  ;;  %v884_v20 = vadd.f32 %v852_v29, %v2870_v1  ;;  %v918_v1 = vmul.f32 %v3821_v41, %v3809_v60  ;;  %v948_v29 = vadd.f32 %v916_v63, %v883_v11 }
  0xf2   : > { %3838 = vst [vmem:[#allocation5_spill] sm:$0xff] %v3040_v27  ;;  %v979_v42 = vadd.f32 %v978_v45, %v977_v4  ;;  %v3056_v27 = vmul.f32 %v2801_v38, %v3842_v14  ;;  %v947_v45 = vadd.f32 %v915_v22, %v882_v16  ;;  %v885_v14 = vadd.f32 %v853_v6, %v2873_v10 }
  0xf3   : > { %3840 = vst [vmem:[#allocation7_spill] sm:$0xff] %v3044_v50  ;;  %v887_v16 = vadd.f32 %v855_v54, %v2879_v32  ;;  %v1045_v22 = vmul.f32 %v943_v48, %v943_v48  ;;  %v919_v38 = vmul.f32 %v3821_v41, %v3810_v44  ;;  %v988_v19 = vsel %vm972_vm4, %v948_v29, 0.0  ;;  %v3848_v18 = vld [vmem:[#allocation29_spill] sm:$0xff] }
  0xf4   : > { %3841 = vst [vmem:[#allocation8_spill] sm:$0xff] %v3052_v43  ;;  %v981_v50 = vadd.f32 %v980_v35, %v979_v42  ;;  %v1043_v43 = vmul.f32 %v941_v57, %v941_v57  ;;  %v986_v35 = vsel %vm972_vm4, %v947_v45, 0.0  ;;  %v1074_v10 = vsel %vm972_vm4, %v1042_v8, 0.0 }
  0xf5   : > { %v1046_v57 = vmul.f32 %v944_v58, %v944_v58  ;;  %v1077_v42 = vsel %vm972_vm4, %v1044_v26, 0.0  ;;  %v950_v32 = vadd.f32 %v918_v1, %v885_v14  ;;  %v888_v54 = vadd.f32 %v2966_v62, %v2882_v55 }
  0xf6   : > { %v983_v4 = vadd.f32 %v982_v56, %v981_v50  ;;  %v949_v50 = vadd.f32 %v917_v7, %v884_v20  ;;  %v1075_v60 = vsel %vm972_vm4, %v1043_v43, 0.0  ;;  %v1047_v20 = vmul.f32 %v945_v24, %v945_v24 }
  0xf7   : > { %v1076_v40 = vadd.f32 %v1075_v60, %v1074_v10  ;;  %v1079_v11 = vsel %vm972_vm4, %v1045_v22, 0.0  ;;  %v921_v58 = vmul.f32 %v3821_v41, %v3812_v13  ;;  %v951_v63 = vadd.f32 %v919_v38, %v886_v61 }
  0xf8   : > { %v985_v15 = vadd.f32 %v984_v25, %v983_v4  ;;  %v990_v48 = vsel %vm972_vm4, %v949_v50, 0.0  ;;  %v992_v26 = vsel %vm972_vm4, %v950_v32, 0.0  ;;  %v1048_v14 = vmul.f32 %v946_v51, %v946_v51 }
  0xf9   : > { %v1078_v56 = vadd.f32 %v1077_v42, %v1076_v40  ;;  %v1081_v7 = vsel %vm972_vm4, %v1046_v57, 0.0  ;;  %v922_v55 = vmul.f32 %v3821_v41, %v3813_v28  ;;  %v952_v62 = vadd.f32 %v920_v36, %v887_v16 }
  0xfa   : > { %v987_v6 = vadd.f32 %v986_v35, %v985_v15  ;;  %v994_v24 = vsel %vm972_vm4, %v951_v63, 0.0  ;;  %v890_v13 = vadd.f32 %v2974_v34, %v2888_v31  ;;  %v1049_v4 = vmul.f32 %v947_v45, %v947_v45 }
  0xfb   : > { %v1080_v25 = vadd.f32 %v1079_v11, %v1078_v56  ;;  %v1083_v1 = vsel %vm972_vm4, %v1047_v20, 0.0  ;;  %v953_v30 = vadd.f32 %v921_v58, %v888_v54  ;;  %v996_v51 = vsel %vm972_vm4, %v952_v62, 0.0  ;;  %v3846_v11 = vld [vmem:[#allocation50_spill] sm:$0xff] }
  0xfc   : > { %v989_v44 = vadd.f32 %v988_v19, %v987_v6  ;;  %v891_v28 = vadd.f32 %v2978_v33, %v2891_v12  ;;  %v1050_v16 = vmul.f32 %v948_v29, %v948_v29  ;;  %v1085_v15 = vsel %vm972_vm4, %v1048_v14, 0.0 }
  0xfd   : > { %v1082_v35 = vadd.f32 %v1081_v7, %v1080_v25  ;;  %v924_v31 = vmul.f32 %v3821_v41, %v3815_v21  ;;  %v954_v34 = vadd.f32 %v922_v55, %v889_v9  ;;  %v998_v45 = vsel %vm972_vm4, %v953_v30, 0.0  ;;  %v3849_v7 = vld [vmem:[#allocation46_spill] sm:$0xff] }
  0xfe   : > { %v991_v43 = vadd.f32 %v990_v48, %v989_v44  ;;  %v1051_v19 = vmul.f32 %v949_v50, %v949_v50  ;;  %v1087_v10 = vsel %vm972_vm4, %v1049_v4, 0.0  ;;  %v925_v12 = vmul.f32 %v3821_v41, %v3819_v37  ;;  %v3844_v48 = vld [vmem:[#allocation25_spill] sm:$0xff]  ;;  %v3845_v37 = vld [vmem:[#allocation26_spill] sm:$0xff] }
  0xff   : > { %v1084_v22 = vadd.f32 %v1083_v1, %v1082_v35  ;;  %v955_v33 = vadd.f32 %v923_v5, %v890_v13  ;;  %v1000_v29 = vsel %vm972_vm4, %v954_v34, 0.0  ;;  %v893_v21 = vadd.f32 %v2986_v3, %v2897_v59  ;;  %v3850_v13 = vld [vmem:[#allocation28_spill] sm:$0xff] }
 0x100   : > { %v993_v8 = vadd.f32 %v992_v26, %v991_v43  ;;  %v1052_v60 = vmul.f32 %v950_v32, %v950_v32  ;;  %v1089_v42 = vsel %vm972_vm4, %v1050_v16, 0.0  ;;  %v956_v47 = vadd.f32 %v924_v31, %v891_v28  ;;  %v3847_v26 = vld [vmem:[#allocation27_spill] sm:$0xff] }
 0x101   : > { %v1086_v6 = vadd.f32 %v1085_v15, %v1084_v22  ;;  %v1002_v50 = vsel %vm972_vm4, %v955_v33, 0.0  ;;  %v894_v40 = vadd.f32 %v3845_v37, %v3844_v48  ;;  %v1053_v44 = vmul.f32 %v951_v63, %v951_v63  ;;  %v3852_v16 = vld [vmem:[#allocation31_spill] sm:$0xff]  ;;  %v3853_v15 = vld [vmem:[#allocation33_spill] sm:$0xff]  ;;  %v3858_v48 = vld [vmem:[#allocation38_spill] sm:$0xff] }
 0x102   : > { %v995_v61 = vadd.f32 %v994_v24, %v993_v8  ;;  %v1091_v20 = vsel %vm972_vm4, %v1051_v19, 0.0  ;;  %v927_v59 = vmul.f32 %v3821_v41, %v3846_v11  ;;  %v957_v3 = vadd.f32 %v925_v12, %v892_v0  ;;  %v3851_v8 = vld [vmem:[#allocation30_spill] sm:$0xff] }
 0x103   : > { %v1088_v36 = vadd.f32 %v1087_v10, %v1086_v6  ;;  %v1004_v32 = vsel %vm972_vm4, %v956_v47, 0.0  ;;  %v895_v56 = vadd.f32 %v3848_v18, %v3847_v26  ;;  %v1054_v43 = vmul.f32 %v952_v62, %v952_v62 }
 0x104   : > { %v997_v38 = vadd.f32 %v996_v51, %v995_v61  ;;  %v1093_v14 = vsel %vm972_vm4, %v1052_v60, 0.0  ;;  %v928_v55 = vmul.f32 %v3821_v41, %v3849_v7  ;;  %v958_v63 = vadd.f32 %v926_v23, %v893_v21  ;;  %v3861_v7 = vld [vmem:[#allocation13_spill] sm:$0xff] }
 0x105   : > { %v1090_v58 = vadd.f32 %v1089_v42, %v1088_v36  ;;  %v1006_v24 = vsel %vm972_vm4, %v957_v3, 0.0  ;;  %v896_v4 = vadd.f32 %v3851_v8, %v3850_v13  ;;  %v1055_v5 = vmul.f32 %v953_v30, %v953_v30  ;;  %v3857_v36 = vld [vmem:[#allocation9_spill] sm:$0xff]  ;;  %v3862_v13 = vld [vmem:[#allocation62_spill] sm:$0xff] }
 0x106   : > { %v999_v57 = vadd.f32 %v998_v45, %v997_v38  ;;  %v1095_v51 = vsel %vm972_vm4, %v1053_v44, 0.0  ;;  %v929_v35 = vmul.f32 %v3821_v41, %v3830_v2  ;;  %v959_v62 = vadd.f32 %v927_v59, %v894_v40  ;;  %v3854_v38 = vld [vmem:[#allocation61_spill] sm:$0xff] }
 0x107   : > { %v1092_v25 = vadd.f32 %v1091_v20, %v1090_v58  ;;  %v1008_v28 = vsel %vm972_vm4, %v958_v63, 0.0  ;;  %v897_v31 = vadd.f32 %v3853_v15, %v3852_v16  ;;  %v1056_v22 = vmul.f32 %v954_v34, %v954_v34  ;;  %v3856_v2 = vld [vmem:[#allocation37_spill] sm:$0xff]  ;;  %v3865_v16 = vld [vmem:[#allocation52_spill] sm:$0xff] }
 0x108   : > { %v1001_v54 = vadd.f32 %v1000_v29, %v999_v57  ;;  %v1097_v0 = vsel %vm972_vm4, %v1054_v43, 0.0  ;;  %v930_v19 = vmul.f32 %v3821_v41, %v3854_v38  ;;  %v960_v30 = vadd.f32 %v928_v55, %v895_v56  ;;  %v3855_v29 = vld [vmem:[#allocation39_spill] sm:$0xff] }
 0x109   : > { %v1094_v61 = vadd.f32 %v1093_v14, %v1092_v25  ;;  %v1010_v10 = vsel %vm972_vm4, %v959_v62, 0.0  ;;  %v898_v6 = vadd.f32 %v3856_v2, %v3855_v29  ;;  %v1057_v57 = vmul.f32 %v955_v33, %v955_v33 }
 0x10a   : > { %v1003_v9 = vadd.f32 %v1002_v50, %v1001_v54  ;;  %v1099_v60 = vsel %vm972_vm4, %v1055_v5, 0.0  ;;  %v931_v42 = vmul.f32 %v3821_v41, %v3834_v53  ;;  %v961_v34 = vadd.f32 %v929_v35, %v896_v4  ;;  %v3860_v53 = vld [vmem:[#allocation41_spill] sm:$0xff]  ;;  %v3863_v5 = vld [vmem:[#allocation16_spill] sm:$0xff] }
 0x10b   : > { %v1096_v12 = vadd.f32 %v1095_v51, %v1094_v61  ;;  %v1012_v23 = vsel %vm972_vm4, %v960_v30, 0.0  ;;  %v899_v37 = vadd.f32 %v3858_v48, %v3857_v36  ;;  %v1058_v54 = vmul.f32 %v956_v47, %v956_v47 }
 0x10c   : > { %v1005_v1 = vadd.f32 %v1004_v32, %v1003_v9  ;;  %v1101_v44 = vsel %vm972_vm4, %v1056_v22, 0.0  ;;  %v932_v20 = vmul.f32 %v3821_v41, %v3836_v49  ;;  %v962_v33 = vadd.f32 %v930_v19, %v897_v31  ;;  %v3859_v32 = vld [vmem:[#allocation10_spill] sm:$0xff]  ;;  %v3867_v22 = vld [vmem:[#allocation7_spill] sm:$0xff] }
 0x10d   : > { %v1098_v50 = vadd.f32 %v1097_v0, %v1096_v12  ;;  %v1014_v11 = vsel %vm972_vm4, %v961_v34, 0.0  ;;  %v900_v58 = vadd.f32 %v3860_v53, %v3859_v32  ;;  %v1059_v18 = vmul.f32 %v957_v3, %v957_v3  ;;  %v3868_v12 = vld [vmem:[#allocation48_spill] sm:$0xff] }
 0x10e   : > { %v1007_v45 = vadd.f32 %v1006_v24, %v1005_v1  ;;  %v1103_v56 = vsel %vm972_vm4, %v1057_v57, 0.0  ;;  %v933_v9 = vmul.f32 %v3821_v41, %v3837_v46  ;;  %v963_v47 = vadd.f32 %v931_v42, %v898_v6  ;;  %v3864_v46 = vld [vmem:[#allocation5_spill] sm:$0xff]  ;;  %v3870_v57 = vld [vmem:[#allocation8_spill] sm:$0xff] }
 0x10f   : > { %v1100_v59 = vadd.f32 %v1099_v60, %v1098_v50  ;;  %v1016_v43 = vsel %vm972_vm4, %v962_v33, 0.0  ;;  %v901_v49 = vadd.f32 %v3036_v52, %v3861_v7  ;;  %v1060_v24 = vmul.f32 %v958_v63, %v958_v63 }
 0x110   : > { %v1009_v21 = vadd.f32 %v1008_v28, %v1007_v45  ;;  %v1105_v25 = vsel %vm972_vm4, %v1058_v54, 0.0  ;;  %v934_v8 = vmul.f32 %v3821_v41, %v3862_v13  ;;  %v964_v3 = vadd.f32 %v932_v20, %v899_v37  ;;  %v3866_v45 = vld [vmem:[#allocation17_spill] sm:$0xff] }
 0x111   : > { %v1102_v14 = vadd.f32 %v1101_v44, %v1100_v59  ;;  %v1018_v4 = vsel %vm972_vm4, %v963_v47, 0.0  ;;  %v902_v51 = vadd.f32 %v3864_v46, %v3863_v5  ;;  %v1061_v28 = vmul.f32 %v959_v62, %v959_v62 }
 0x112   : > { %v1011_v40 = vadd.f32 %v1010_v10, %v1009_v21  ;;  %v1107_v61 = vsel %vm972_vm4, %v1059_v18, 0.0  ;;  %v935_v52 = vmul.f32 %v3821_v41, %v3865_v16  ;;  %v965_v63 = vadd.f32 %v933_v9, %v900_v58  ;;  %v3869_v21 = vld [vmem:[#allocation20_spill] sm:$0xff]  ;;  %v3873_v9 = vld [vmem:[#allocation34_spill] sm:$0xff] }
 0x113   : > { %v1104_v1 = vadd.f32 %v1103_v56, %v1102_v14  ;;  %v1020_v15 = vsel %vm972_vm4, %v964_v3, 0.0  ;;  %v903_v0 = vadd.f32 %v3867_v22, %v3866_v45  ;;  %v1062_v19 = vmul.f32 %v960_v30, %v960_v30  ;;  %v3872_v58 = vld [vmem:[#allocation24_spill] sm:$0xff] }
 0x114   : > { %v1013_v26 = vadd.f32 %v1012_v23, %v1011_v40  ;;  %v1109_v10 = vsel %vm972_vm4, %v1060_v24, 0.0  ;;  %v936_v29 = vmul.f32 %v3821_v41, %v3868_v12  ;;  %v966_v62 = vadd.f32 %v934_v8, %v901_v49  ;;  %v3871_v40 = vld [vmem:[#allocation23_spill] sm:$0xff] }
 0x115   : > { %v1106_v31 = vadd.f32 %v1105_v25, %v1104_v1  ;;  %v1022_v2 = vsel %vm972_vm4, %v965_v63, 0.0  ;;  %v904_v60 = vadd.f32 %v3870_v57, %v3869_v21  ;;  %v1063_v23 = vmul.f32 %v961_v34, %v961_v34 }
 0x116   : > { %v1015_v55 = vadd.f32 %v1014_v11, %v1013_v26  ;;  %v1111_v50 = vsel %vm972_vm4, %v1061_v28, 0.0  ;;  %v937_v36 = vmul.f32 %v3821_v41, %v3843_v17  ;;  %v967_v30 = vadd.f32 %v935_v52, %v902_v51 }
 0x117   : > { %v1108_v6 = vadd.f32 %v1107_v61, %v1106_v31  ;;  %v1024_v48 = vsel %vm972_vm4, %v966_v62, 0.0  ;;  %v905_v54 = vadd.f32 %v3056_v27, %v3871_v40  ;;  %v1064_v20 = vmul.f32 %v962_v33, %v962_v33 }
 0x118   : > { %v1017_v35 = vadd.f32 %v1016_v43, %v1015_v55  ;;  %v1113_v11 = vsel %vm972_vm4, %v1062_v19, 0.0  ;;  %v938_v59 = vmul.f32 0.0, %v3821_v41  ;;  %v968_v32 = vadd.f32 %v936_v29, %v903_v0 }
 0x119   : > { %v1110_v37 = vadd.f32 %v1109_v10, %v1108_v6  ;;  %v1026_v34 = vsel %vm972_vm4, %v967_v30, 0.0  ;;  %v906_v17 = vadd.f32 %v3064_v39, %v3872_v58  ;;  %v1065_v18 = vmul.f32 %v963_v47, %v963_v47 }
 0x11a   : > { %v1019_v38 = vadd.f32 %v1018_v4, %v1017_v35  ;;  %v1115_v56 = vsel %vm972_vm4, %v1063_v23, 0.0  ;;  %v939_v27 = vmul.f32 %v3821_v41, %v3873_v9  ;;  %v969_v43 = vadd.f32 %v937_v36, %v904_v60 }
 0x11b   : > { %v1112_v53 = vadd.f32 %v1111_v50, %v1110_v37  ;;  %v1028_v33 = vsel %vm972_vm4, %v968_v32, 0.0  ;;  %v1066_v49 = vmul.f32 %v964_v3, %v964_v3  ;;  %v1117_v55 = vsel %vm972_vm4, %v1064_v20, 0.0 }
 0x11c   : > { %v1021_v42 = vadd.f32 %v1020_v15, %v1019_v38  ;;  %v970_v24 = vadd.f32 %v938_v59, %v905_v54  ;;  %v1030_v25 = vsel %vm972_vm4, %v969_v43, 0.0  ;;  %v1067_v8 = vmul.f32 %v965_v63, %v965_v63 }
 0x11d   : > { %v1114_v14 = vadd.f32 %v1113_v11, %v1112_v53  ;;  %v1119_v47 = vsel %vm972_vm4, %v1065_v18, 0.0  ;;  %v971_v4 = vadd.f32 %v939_v27, %v906_v17  ;;  %v1068_v46 = vmul.f32 %v966_v62, %v966_v62 }
 0x11e   : > { %v1023_v44 = vadd.f32 %v1022_v2, %v1021_v42  ;;  %v1032_v1 = vsel %vm972_vm4, %v970_v24, 0.0  ;;  %v1121_v51 = vsel %vm972_vm4, %v1066_v49, 0.0  ;;  %v1069_v61 = vmul.f32 %v967_v30, %v967_v30 }
 0x11f   : > { %v1116_v13 = vadd.f32 %v1115_v56, %v1114_v14  ;;  %v1034_v3 = vsel %vm972_vm4, %v971_v4, 0.0  ;;  %v1123_v16 = vsel %vm972_vm4, %v1067_v8, 0.0  ;;  %v1070_v63 = vmul.f32 %v968_v32, %v968_v32 }
 0x120   : > { %v1025_v26 = vadd.f32 %v1024_v48, %v1023_v44  ;;  %v1125_v31 = vsel %vm972_vm4, %v1068_v46, 0.0  ;;  %v1071_v22 = vmul.f32 %v969_v43, %v969_v43  ;;  %v1127_v0 = vsel %vm972_vm4, %v1069_v61, 0.0 }
 0x121   : > { %v1118_v41 = vadd.f32 %v1117_v55, %v1116_v13  ;;  %v1072_v10 = vmul.f32 %v970_v24, %v970_v24  ;;  %v1129_v12 = vsel %vm972_vm4, %v1070_v63, 0.0  ;;  %v1073_v62 = vmul.f32 %v971_v4, %v971_v4 }
 0x122   : > { %v1027_v7 = vadd.f32 %v1026_v34, %v1025_v26  ;;  %v1131_v2 = vsel %vm972_vm4, %v1071_v22, 0.0 }
 0x123   : > { %v1120_v35 = vadd.f32 %v1119_v47, %v1118_v41  ;;  %v1133_v57 = vsel %vm972_vm4, %v1072_v10, 0.0  ;;  %v1135_v42 = vsel %vm972_vm4, %v1073_v62, 0.0 }
 0x124   : > { %v1029_v39 = vadd.f32 %v1028_v33, %v1027_v7 }
 0x125   : > { %v1122_v52 = vadd.f32 %v1121_v51, %v1120_v35 }
 0x126   : > { %v1031_v5 = vadd.f32 %v1030_v25, %v1029_v39 }
 0x127   : > { %v1124_v45 = vadd.f32 %v1123_v16, %v1122_v52 }
 0x128   : > { %v1033_v28 = vadd.f32 %v1032_v1, %v1031_v5 }
 0x129   : > { %v1126_v19 = vadd.f32 %v1125_v31, %v1124_v45 }
 0x12a   : > { %v1035_v15 = vadd.f32 %v1034_v3, %v1033_v28 }
 0x12b   : > { %v1128_v29 = vadd.f32 %v1127_v0, %v1126_v19 }
 0x12c   : > { %v1036_v38 = vrot.slane %v1035_v15, 4 }
 0x12d   : > { %v1130_v21 = vadd.f32 %v1129_v12, %v1128_v29 }
 0x12e   : > { %v1037_v6 = vadd.f32 %v1036_v38, %v1035_v15 }
 0x12f   : > { %v1132_v60 = vadd.f32 %v1131_v2, %v1130_v21 }
 0x130   : > { %v1038_v23 = vrot.slane %v1037_v6, 2 }
 0x131   : > { %v1134_v50 = vadd.f32 %v1133_v57, %v1132_v60 }
 0x132   : > { %v1039_v30 = vadd.f32 %v1038_v23, %v1037_v6 }
 0x133   : > { %v1136_v36 = vadd.f32 %v1135_v42, %v1134_v50 }
 0x134   : > { %v1040_v40 = vrot.slane %v1039_v30, 1 }
 0x135   : > { %v1137_v48 = vrot.slane %v1136_v36, 4 }
 0x136   : > { %v1041_v20 = vadd.f32 %v1040_v40, %v1039_v30 }
 0x137   : > { %v1138_v37 = vadd.f32 %v1137_v48, %v1136_v36 }
 0x139   : > { %v1139_v54 = vrot.slane %v1138_v37, 2 }
 0x13b   : > { %v1140_v44 = vadd.f32 %v1139_v54, %v1138_v37 }
 0x13d   : > { %v1141_v11 = vrot.slane %v1140_v44, 1 }
 0x13f   : > { %v1142_v59 = vadd.f32 %v1141_v11, %v1140_v44 }
 0x141   : > { %v1144_v32 = vsel %vm1143_vm5, %v1041_v20, %v1142_v59 }
 0x142   : > { %1146 = vst.msk [vmem:[%s136_s16] sm:$0x3] %vm1145_vm6, %v1144_v32 }
 0x143   : > { %1305 = shalt.err (!%p1302_p3)
}
 0x144   : > { %1236 = dma.vmem_to_hbm [thread:$0]  (%p1396_p5), %s1161_s17, 32, %s1163_s21, %s1148_s13  }
 0x145 PF: > { %p1242_p4 = scmp.ge.s32.totalorder %s1340_s12, 2  ;;  %s1174_s29 = sand.u32 1, %s1328_s9  }
 0x146   : > { %s1175_s30 = scalar_lea.sflag [#allocation3], %s1174_s29 }
 0x147   : > { %p1239_p7 = pnand %p1242_p4, %p1400_p6 }
 0x149   : > { %p1240_p8 = pneg %p1239_p7 }
 0x14b   : > { %1323 = dma.done.wait (%p1240_p8), %s1175_s30, 32  }
 0x14c   : > { %1325 = vsyncadd (%p1240_p8), %s1175_s30, 4294967264  ;;  %p12_p9 = scmp.ge.s32.totalorder %s1383_s15, 4   ;;  %s3874_s9 = smov %s1332_s10 }
 0x14d   : > { %s3875_s10 = smov %s1336_s11  ;;  %s3876_s11 = smov %s1394_s18 }
 0x14e   : > { %s3877_s12 = smov %s1383_s15  ;;  %14 = sbr.rel (!%p12_p9) target bundleno = 3 (0x3), region = 63 }
 0x153   :  { %1181 = vsyncpa [#allocation3], 1 }
 0x154   :  { %1183 = vsyncpa [#allocation3 + $0x1], 1 }

</bundles_post_ra>
